<compile_context>
chip_gen: v7x
topology: tpu7x:2x2x1
jax: 0.10.0
libtpu: 0.0.40
codegen_flags: <defaults>
</compile_context>

<pallas_src>
import jax
import jax.numpy as jnp
from jax import lax
from jax.experimental import pallas as pl
from jax.experimental.pallas import tpu as pltpu  # noqa: F401  (TPU backend assumed)

# ----------------------------- model hyper-parameters -----------------------------
D_MODEL = 32
N_HEADS = 4
D_K = 8
D_V = 8
D_FF = 64
SEQ = 8
BATCH = 2
BS = BATCH * SEQ                 # batch folded into matmul rows
HDK = N_HEADS * D_K              # 32
HDV = N_HEADS * D_V              # 32
QKV = HDK + HDK + HDV            # 96 fused q|k|v lanes
LN_EPS = 1e-5
_SCALE = 1.0 / float(D_K) ** 0.5

# lane offsets inside the (32, 384) bf16 weight slab
# (every segment lies inside one 128-lane tile -> static slices never cross a tile)
OFF_SA_QKV = 0        # 96 lanes : self-attn  [WQ*scale | WK | WV]
OFF_EA_QKV = 128      # 96 lanes : enc-dec    [WQ*scale | WK | WV]
OFF_FF_W1 = 256       # 64 lanes : FFN conv1 weight
OFF_SA_WO = 320       # 32 lanes : self-attn output projection
OFF_EA_WO = 352       # 32 lanes : enc-dec output projection
W32_LANES = 384

# row indices inside the (16, 128) f32 bias / LayerNorm parameter slab
ROW_SA_BQKV, ROW_SA_BO, ROW_SA_G, ROW_SA_B = 0, 1, 2, 3
ROW_EA_BQKV, ROW_EA_BO, ROW_EA_G, ROW_EA_B = 4, 5, 6, 7
ROW_FF_B1, ROW_FF_B2, ROW_FF_G, ROW_FF_B = 8, 9, 10, 11
P_ROWS, P_LANES = 16, 128

# lane offsets inside the single (B*S, 128) f32 output slab
OUT_Y = 0
OUT_SA = D_MODEL                      # 32
OUT_EA = OUT_SA + N_HEADS * SEQ       # 64
OUT_PAD = 128 - (OUT_EA + N_HEADS * SEQ)   # 32 zero lanes


# --------------------------------- kernel helpers ---------------------------------
def _layer_norm(x, gamma, beta):
    # x: (BS, D) f32 ; gamma/beta: (1, D) f32  (biased variance, like nn.LayerNorm)
    mean = jnp.mean(x, axis=-1, keepdims=True)
    c = x - mean
    var = jnp.mean(c * c, axis=-1, keepdims=True)
    return c * lax.rsqrt(var + LN_EPS) * gamma + beta


def _mha(x_q, x_kv, bias, w_qkv, b_qkv, w_o, b_o, gamma, beta):
    """One MultiHeadAttention block, batch folded into matmul rows.

    x_q, x_kv : (BS, D) f32 activations (residual = x_q, as in the PyTorch module)
    bias      : (B, S, S) f32 additive attention bias (0 visible, -1e9 masked)
    w_qkv     : (D, QKV) bf16 fused [WQ*scale | WK | WV];  w_o: (HDV, D) bf16
    returns   : (BS, D) f32 output, list of N_HEADS lane-packed (BS, S) f32 probs
    """
    # One fused QKV projection per distinct input: f32 accumulate, f32 bias,
    # then a single cast to bf16 (q/k/v only ever feed the MXU afterwards).
    qkv_q = jnp.dot(x_q.astype(jnp.bfloat16), w_qkv,
                    preferred_element_type=jnp.float32) + b_qkv           # (BS, 96)
    if x_kv is x_q:            # self-attention: reuse the projection
        qkv_kv = qkv_q
    else:                      # enc-dec attention: K/V come from the encoder
        qkv_kv = jnp.dot(x_kv.astype(jnp.bfloat16), w_qkv,
                         preferred_element_type=jnp.float32) + b_qkv

    q3 = qkv_q[:, :HDK].reshape(BATCH, SEQ, HDK).astype(jnp.bfloat16)     # (B,S,HDK)
    kv3 = qkv_kv[:, HDK:].reshape(BATCH, SEQ, HDK + HDV).astype(jnp.bfloat16)

    out = b_o                                # (1, D) f32; broadcasts on first add
    attn = []
    for h in range(N_HEADS):                 # tiny static unroll over heads
        qh = q3[:, :, h * D_K:(h + 1) * D_K]                        # (B,S,Dk) bf16
        kh = kv3[:, :, h * D_K:(h + 1) * D_K]
        vh = kv3[:, :, HDK + h * D_V:HDK + (h + 1) * D_V]
        # 1/sqrt(d_k) already folded into W_Q / b_q host-side
        s = jnp.einsum('bqd,bkd->bqk', qh, kh,
                       preferred_element_type=jnp.float32) + bias         # (B,S,S) f32
        m = jnp.max(s, axis=-1, keepdims=True)
        e = jnp.exp(s - m)
        # exact reciprocal for parity with nn.Softmax (approx=True would be ~2^-12 off)
        p = e * pl.reciprocal(jnp.sum(e, axis=-1, keepdims=True), approx=False)
        ctx = jnp.einsum('bqk,bkd->bqd', p.astype(jnp.bfloat16), vh,
                         preferred_element_type=jnp.float32)              # (B,S,Dv)
        # per-head output projection, accumulated: no ctx2d concat needed
        out = out + jnp.dot(ctx.reshape(BS, D_V).astype(jnp.bfloat16),
                            w_o[h * D_V:(h + 1) * D_V, :],
                            preferred_element_type=jnp.float32)
        attn.append(p.reshape(BS, SEQ))                                   # lane-packed
    y = _layer_norm(out + x_q, gamma, beta)
    return y, attn


def _ffn(x, w1, b1, w2, b2, gamma, beta):
    # Conv1d(kernel_size=1) == per-position linear; NCL transpose folded into weights.
    h = jnp.dot(x.astype(jnp.bfloat16), w1, preferred_element_type=jnp.float32) + b1
    h = jnp.maximum(h, 0.0)                                               # ReLU
    o = jnp.dot(h.astype(jnp.bfloat16), w2, preferred_element_type=jnp.float32) + b2
    return _layer_norm(o + x, gamma, beta)


def _decoder_layer_kernel(dec_ref, enc_ref, smask_ref, emask_ref,
                          w32_ref, wff2_ref, p_ref, out_ref):
    dec = dec_ref[...]                                   # (BS, D) f32
    enc = enc_ref[...]                                   # (BS, D) f32

    # int mask -> additive f32 bias, one VPU pass per mask (no per-batch loop)
    self_bias = smask_ref[...].astype(jnp.float32) * (-1e9)      # (B,S,S)
    enc_bias = emask_ref[...].astype(jnp.float32) * (-1e9)

    prm = p_ref[...]                                     # (16, 128) f32 bias/LN slab

    # ---- decoder self-attention ----
    x1, sa_attn = _mha(
        dec, dec, self_bias,
        w32_ref[:, OFF_SA_QKV:OFF_SA_QKV + QKV],
        prm[ROW_SA_BQKV:ROW_SA_BQKV + 1, :QKV],
        w32_ref[:, OFF_SA_WO:OFF_SA_WO + D_MODEL],
        prm[ROW_SA_BO:ROW_SA_BO + 1, :D_MODEL],
        prm[ROW_SA_G:ROW_SA_G + 1, :D_MODEL],
        prm[ROW_SA_B:ROW_SA_B + 1, :D_MODEL])

    # ---- encoder-decoder attention ----
    x2, ea_attn = _mha(
        x1, enc, enc_bias,
        w32_ref[:, OFF_EA_QKV:OFF_EA_QKV + QKV],
        prm[ROW_EA_BQKV:ROW_EA_BQKV + 1, :QKV],
        w32_ref[:, OFF_EA_WO:OFF_EA_WO + D_MODEL],
        prm[ROW_EA_BO:ROW_EA_BO + 1, :D_MODEL],
        prm[ROW_EA_G:ROW_EA_G + 1, :D_MODEL],
        prm[ROW_EA_B:ROW_EA_B + 1, :D_MODEL])

    # ---- position-wise feed forward ----
    y = _ffn(
        x2,
        w32_ref[:, OFF_FF_W1:OFF_FF_W1 + D_FF],
        prm[ROW_FF_B1:ROW_FF_B1 + 1, :D_FF],
        wff2_ref[...],
        prm[ROW_FF_B2:ROW_FF_B2 + 1, :D_MODEL],
        prm[ROW_FF_G:ROW_FF_G + 1, :D_MODEL],
        prm[ROW_FF_B:ROW_FF_B + 1, :D_MODEL])

    # single lane-dense (BS, 128) store: [y | self-attn heads | enc-attn heads | pad]
    out_ref[...] = jnp.concatenate(
        [y] + sa_attn + ea_attn + [jnp.zeros((BS, OUT_PAD), jnp.float32)], axis=-1)


# --------------------------------- JAX wrapper -------------------------------------
def decoder_layer_forward(params, dec_inputs, enc_outputs,
                          dec_self_attn_mask, dec_enc_attn_mask):
    batch, seq, d_model = dec_inputs.shape
    bs = batch * seq

    out = pl.pallas_call(
        _decoder_layer_kernel,
        out_shape=jax.ShapeDtypeStruct((bs, 128), jnp.float32),
    )(dec_inputs.reshape(bs, d_model),
      enc_outputs.reshape(bs, d_model),
      dec_self_attn_mask.astype(jnp.int32),
      dec_enc_attn_mask.astype(jnp.int32),
      params["w32"], params["w_ff2"], params["pvec"])

    dec_out = out[:, OUT_Y:OUT_Y + d_model].reshape(batch, seq, d_model)

    def unpack(slab):   # (B*S, H*S) -> (B, H, S, S)
        return jnp.transpose(slab.reshape(batch, seq, N_HEADS, seq), (0, 2, 1, 3))

    self_attn = unpack(out[:, OUT_SA:OUT_SA + N_HEADS * seq])
    enc_attn = unpack(out[:, OUT_EA:OUT_EA + N_HEADS * seq])
    return dec_out, self_attn, enc_attn


# ------------------------- parameter init & host-side packing ----------------------
def init_mha_params(key):
    ks = jax.random.split(key, 8)
    s = 0.05
    return {
        "wq": jax.random.normal(ks[0], (D_MODEL, HDK), jnp.float32) * s,
        "bq": jax.random.normal(ks[1], (HDK,), jnp.float32) * 0.02,
        "wk": jax.random.normal(ks[2], (D_MODEL, HDK), jnp.float32) * s,
        "bk": jax.random.normal(ks[3], (HDK,), jnp.float32) * 0.02,
        "wv": jax.random.normal(ks[4], (D_MODEL, HDV), jnp.float32) * s,
        "bv": jax.random.normal(ks[5], (HDV,), jnp.float32) * 0.02,
        "wo": jax.random.normal(ks[6], (HDV, D_MODEL), jnp.float32) * s,
        "bo": jax.random.normal(ks[7], (D_MODEL,), jnp.float32) * 0.02,
        "gamma": jnp.ones((D_MODEL,), jnp.float32),
        "beta": jnp.zeros((D_MODEL,), jnp.float32),
    }


def init_ffn_params(key):
    ks = jax.random.split(key, 4)
    s = 0.05
    return {
        "w1": jax.random.normal(ks[0], (D_MODEL, D_FF), jnp.float32) * s,
        "b1": jax.random.normal(ks[1], (D_FF,), jnp.float32) * 0.02,
        "w2": jax.random.normal(ks[2], (D_FF, D_MODEL), jnp.float32) * s,
        "b2": jax.random.normal(ks[3], (D_MODEL,), jnp.float32) * 0.02,
        "gamma": jnp.ones((D_MODEL,), jnp.float32),
        "beta": jnp.zeros((D_MODEL,), jnp.float32),
    }


def pack_params(sa, ea, ff):
    """Pack all parameters into 3 arrays (2 bf16 weight slabs + 1 f32 bias/LN slab)."""
    def qkv_slab(m):   # fold 1/sqrt(d_k) into W_Q
        return jnp.concatenate([m["wq"] * _SCALE, m["wk"], m["wv"]], axis=1)  # (D, 96)

    w32 = jnp.zeros((D_MODEL, W32_LANES), jnp.float32)
    w32 = w32.at[:, OFF_SA_QKV:OFF_SA_QKV + QKV].set(qkv_slab(sa))
    w32 = w32.at[:, OFF_EA_QKV:OFF_EA_QKV + QKV].set(qkv_slab(ea))
    w32 = w32.at[:, OFF_FF_W1:OFF_FF_W1 + D_FF].set(ff["w1"])
    w32 = w32.at[:, OFF_SA_WO:OFF_SA_WO + D_MODEL].set(sa["wo"])
    w32 = w32.at[:, OFF_EA_WO:OFF_EA_WO + D_MODEL].set(ea["wo"])
    w32 = w32.astype(jnp.bfloat16)

    w_ff2 = ff["w2"].astype(jnp.bfloat16)                      # (D_FF, D_MODEL)

    def bias_qkv(m):   # fold 1/sqrt(d_k) into b_q
        return jnp.concatenate([m["bq"] * _SCALE, m["bk"], m["bv"]])        # (96,)

    pvec = jnp.zeros((P_ROWS, P_LANES), jnp.float32)
    rows = [
        (ROW_SA_BQKV, bias_qkv(sa)), (ROW_SA_BO, sa["bo"]),
        (ROW_SA_G, sa["gamma"]), (ROW_SA_B, sa["beta"]),
        (ROW_EA_BQKV, bias_qkv(ea)), (ROW_EA_BO, ea["bo"]),
        (ROW_EA_G, ea["gamma"]), (ROW_EA_B, ea["beta"]),
        (ROW_FF_B1, ff["b1"]), (ROW_FF_B2, ff["b2"]),
        (ROW_FF_G, ff["gamma"]), (ROW_FF_B, ff["beta"]),
    ]
    for r, v in rows:
        pvec = pvec.at[r, :v.shape[0]].set(v)
    return {"w32": w32, "w_ff2": w_ff2, "pvec": pvec}


# ------------------------------ pure-JAX reference ---------------------------------
def reference_decoder_layer(sa, ea, ff, dec, enc, smask, emask):
    """f32 reference with bf16-rounded weights (mirrors the PyTorch module)."""
    def rb(w):
        return w.astype(jnp.bfloat16).astype(jnp.float32)

    def ln(x, g, b):
        mu = jnp.mean(x, -1, keepdims=True)
        v = jnp.mean((x - mu) ** 2, -1, keepdims=True)
        return (x - mu) / jnp.sqrt(v + LN_EPS) * g + b

    def mha(m, xq, xkv, mask):
        b_, s_, _ = xq.shape
        q = (xq @ rb(m["wq"]) + m["bq"]).reshape(b_, s_, N_HEADS, D_K)
        k = (xkv @ rb(m["wk"]) + m["bk"]).reshape(b_, s_, N_HEADS, D_K)
        v = (xkv @ rb(m["wv"]) + m["bv"]).reshape(b_, s_, N_HEADS, D_V)
        q, k, v = (jnp.transpose(t, (0, 2, 1, 3)) for t in (q, k, v))
        sc = jnp.einsum('bhqd,bhkd->bhqk', q, k) / jnp.sqrt(jnp.float32(D_K))
        sc = jnp.where(mask[:, None, :, :].astype(bool), -1e9, sc)
        p = jax.nn.softmax(sc, axis=-1)
        ctx = jnp.einsum('bhqk,bhkd->bhqd', p, v)
        ctx = jnp.transpose(ctx, (0, 2, 1, 3)).reshape(b_, s_, N_HEADS * D_V)
        out = ctx @ rb(m["wo"]) + m["bo"]
        return ln(out + xq, m["gamma"], m["beta"]), p

    def ffn(m, x):
        h = jnp.maximum(x @ rb(m["w1"]) + m["b1"], 0.0)
        o = h @ rb(m["w2"]) + m["b2"]
        return ln(o + x, m["gamma"], m["beta"])

    x1, a1 = mha(sa, dec, dec, smask)
    x2, a2 = mha(ea, x1, enc, emask)
    return ffn(ff, x2), a1, a2


# --------------------------------------- main --------------------------------------
if __name__ == "__main__":
    root = jax.random.PRNGKey(0)
    k_in, k_enc, k1, k2, k3 = jax.random.split(root, 5)

    sa_raw = init_mha_params(k1)
    ea_raw = init_mha_params(k2)
    ff_raw = init_ffn_params(k3)
    params = pack_params(sa_raw, ea_raw, ff_raw)

    dec_inputs = jax.random.normal(k_in, (BATCH, SEQ, D_MODEL), jnp.float32)
    enc_outputs = jax.random.normal(k_enc, (BATCH, SEQ, D_MODEL), jnp.float32)

    # causal (subsequent-position) mask for decoder self-attention; no mask for enc-dec
    causal = jnp.triu(jnp.ones((SEQ, SEQ), jnp.int32), k=1)
    dec_self_attn_mask = jnp.broadcast_to(causal, (BATCH, SEQ, SEQ))
    dec_enc_attn_mask = jnp.zeros((BATCH, SEQ, SEQ), jnp.int32)

    fwd = jax.jit(decoder_layer_forward)
    dec_out, self_attn, enc_attn = fwd(
        params, dec_inputs, enc_outputs, dec_self_attn_mask, dec_enc_attn_mask)
    jax.block_until_ready((dec_out, self_attn, enc_attn))

    # shape / sanity checks
    assert dec_out.shape == (BATCH, SEQ, D_MODEL)
    assert self_attn.shape == (BATCH, N_HEADS, SEQ, SEQ)
    assert enc_attn.shape == (BATCH, N_HEADS, SEQ, SEQ)
    assert bool(jnp.all(jnp.isfinite(dec_out)))
    assert bool(jnp.allclose(jnp.sum(self_attn, axis=-1), 1.0, atol=1e-3))
    future = jnp.triu(jnp.ones((SEQ, SEQ), bool), k=1)
    assert bool(jnp.max(jnp.where(future, self_attn, 0.0)) < 1e-6)

    # pure-JAX reference check (f32 math, bf16-rounded weights like the kernel)
    ref_out, ref_sa, ref_ea = reference_decoder_layer(
        sa_raw, ea_raw, ff_raw, dec_inputs, enc_outputs,
        dec_self_attn_mask, dec_enc_attn_mask)
    assert bool(jnp.allclose(dec_out, ref_out, atol=5e-2, rtol=5e-2))
    assert bool(jnp.allclose(self_attn, ref_sa, atol=2e-2))
    assert bool(jnp.allclose(enc_attn, ref_ea, atol=2e-2))

    print("KERNEL_OK")
</pallas_src>

<mosaic_0001>
module attributes {stable_mosaic.version = 11 : i64} {
  func.func @_decoder_layer_kernel(%arg0: memref<16x32xf32, #tpu.memory_space<vmem>>, %arg1: memref<16x32xf32, #tpu.memory_space<vmem>>, %arg2: memref<2x8x8xi32, #tpu.memory_space<vmem>>, %arg3: memref<2x8x8xi32, #tpu.memory_space<vmem>>, %arg4: memref<32x384xbf16, #tpu.memory_space<vmem>>, %arg5: memref<64x32xbf16, #tpu.memory_space<vmem>>, %arg6: memref<16x128xf32, #tpu.memory_space<vmem>>, %arg7: memref<16x128xf32, #tpu.memory_space<vmem>>) attributes {dimension_semantics = [], scalar_prefetch = 0 : i64, scratch_operands = 0 : i64, tpu.core_type = #tpu.core_type<tc>} {
    %c0 = arith.constant 0 : index
    %c0_0 = arith.constant 0 : index
    %0 = vector.load %arg0[%c0, %c0_0] : memref<16x32xf32, #tpu.memory_space<vmem>>, vector<16x32xf32>
    %c0_1 = arith.constant 0 : index
    %c0_2 = arith.constant 0 : index
    %1 = vector.load %arg1[%c0_1, %c0_2] : memref<16x32xf32, #tpu.memory_space<vmem>>, vector<16x32xf32>
    %c0_3 = arith.constant 0 : index
    %c0_4 = arith.constant 0 : index
    %c0_5 = arith.constant 0 : index
    %2 = vector.load %arg2[%c0_3, %c0_4, %c0_5] : memref<2x8x8xi32, #tpu.memory_space<vmem>>, vector<2x8x8xi32>
    %3 = arith.sitofp %2 : vector<2x8x8xi32> to vector<2x8x8xf32>
    %cst = arith.constant -1.000000e+09 : f32
    %4 = vector.broadcast %cst : f32 to vector<2x8x8xf32>
    %5 = arith.mulf %3, %4 : vector<2x8x8xf32>
    %c0_6 = arith.constant 0 : index
    %c0_7 = arith.constant 0 : index
    %c0_8 = arith.constant 0 : index
    %6 = vector.load %arg3[%c0_6, %c0_7, %c0_8] : memref<2x8x8xi32, #tpu.memory_space<vmem>>, vector<2x8x8xi32>
    %7 = arith.sitofp %6 : vector<2x8x8xi32> to vector<2x8x8xf32>
    %cst_9 = arith.constant -1.000000e+09 : f32
    %8 = vector.broadcast %cst_9 : f32 to vector<2x8x8xf32>
    %9 = arith.mulf %7, %8 : vector<2x8x8xf32>
    %c0_10 = arith.constant 0 : index
    %c0_11 = arith.constant 0 : index
    %10 = vector.load %arg6[%c0_10, %c0_11] : memref<16x128xf32, #tpu.memory_space<vmem>>, vector<16x128xf32>
    %c0_12 = arith.constant 0 : index
    %c0_13 = arith.constant 0 : index
    %11 = vector.load %arg4[%c0_12, %c0_13] : memref<32x384xbf16, #tpu.memory_space<vmem>>, vector<32x96xbf16>
    %12 = vector.extract_strided_slice %10 {offsets = [0, 0], sizes = [1, 96], strides = [1, 1]} : vector<16x128xf32> to vector<1x96xf32>
    %c0_14 = arith.constant 0 : index
    %c320 = arith.constant 320 : index
    %13 = vector.load %arg4[%c0_14, %c320] : memref<32x384xbf16, #tpu.memory_space<vmem>>, vector<32x32xbf16>
    %14 = vector.extract_strided_slice %10 {offsets = [1, 0], sizes = [1, 32], strides = [1, 1]} : vector<16x128xf32> to vector<1x32xf32>
    %15 = vector.extract_strided_slice %10 {offsets = [2, 0], sizes = [1, 32], strides = [1, 1]} : vector<16x128xf32> to vector<1x32xf32>
    %16 = vector.extract_strided_slice %10 {offsets = [3, 0], sizes = [1, 32], strides = [1, 1]} : vector<16x128xf32> to vector<1x32xf32>
    %17 = arith.truncf %0 : vector<16x32xf32> to vector<16x32xbf16>
    %cst_15 = arith.constant dense<0.000000e+00> : vector<16x96xf32>
    %18 = tpu.matmul %17, %11, %cst_15 {dimension_numbers = #tpu.dot_dimension_numbers<[1], [0], [0], [1], [0, 0, 1, 1], [], []>} : vector<16x32xbf16>, vector<32x96xbf16>, vector<16x96xf32> -> vector<16x96xf32>
    %19 = vector.broadcast %12 : vector<1x96xf32> to vector<16x96xf32>
    %20 = arith.addf %18, %19 : vector<16x96xf32>
    %21 = vector.extract_strided_slice %20 {offsets = [0, 0], sizes = [16, 32], strides = [1, 1]} : vector<16x96xf32> to vector<16x32xf32>
    %22 = vector.shape_cast %21 : vector<16x32xf32> to vector<2x8x32xf32>
    %23 = arith.truncf %22 : vector<2x8x32xf32> to vector<2x8x32xbf16>
    %24 = vector.extract_strided_slice %20 {offsets = [0, 32], sizes = [16, 64], strides = [1, 1]} : vector<16x96xf32> to vector<16x64xf32>
    %25 = vector.shape_cast %24 : vector<16x64xf32> to vector<2x8x64xf32>
    %26 = arith.truncf %25 : vector<2x8x64xf32> to vector<2x8x64xbf16>
    %27 = vector.extract_strided_slice %23 {offsets = [0, 0, 0], sizes = [2, 8, 8], strides = [1, 1, 1]} : vector<2x8x32xbf16> to vector<2x8x8xbf16>
    %28 = vector.extract_strided_slice %26 {offsets = [0, 0, 0], sizes = [2, 8, 8], strides = [1, 1, 1]} : vector<2x8x64xbf16> to vector<2x8x8xbf16>
    %29 = vector.extract_strided_slice %26 {offsets = [0, 0, 32], sizes = [2, 8, 8], strides = [1, 1, 1]} : vector<2x8x64xbf16> to vector<2x8x8xbf16>
    "tpu.trace_start"() <{level = 10 : i32, message = "bqd,bkd->bqk"}> : () -> ()
    %cst_16 = arith.constant dense<0.000000e+00> : vector<2x8x8xf32>
    %30 = tpu.matmul %27, %28, %cst_16 {dimension_numbers = #tpu.dot_dimension_numbers<[2], [2], [1], [1], [0, 0, 0, 1, 1, 1], [0], [0]>} : vector<2x8x8xbf16>, vector<2x8x8xbf16>, vector<2x8x8xf32> -> vector<2x8x8xf32>
    "tpu.trace_stop"() : () -> ()
    %31 = arith.addf %30, %5 : vector<2x8x8xf32>
    %cst_17 = arith.constant dense<0xFF800000> : vector<2x8xf32>
    %32 = vector.multi_reduction <maximumf>, %31, %cst_17 [2] : vector<2x8x8xf32> to vector<2x8xf32>
    %33 = vector.shape_cast %32 : vector<2x8xf32> to vector<2x8x1xf32>
    %34 = vector.broadcast %33 : vector<2x8x1xf32> to vector<2x8x8xf32>
    %35 = arith.subf %31, %34 : vector<2x8x8xf32>
    %36 = math.exp %35 : vector<2x8x8xf32>
    %cst_18 = arith.constant dense<0.000000e+00> : vector<2x8xf32>
    %37 = vector.multi_reduction <add>, %36, %cst_18 [2] : vector<2x8x8xf32> to vector<2x8xf32>
    %38 = vector.shape_cast %37 : vector<2x8xf32> to vector<2x8x1xf32>
    %39 = tpu.reciprocal %38 : vector<2x8x1xf32> -> vector<2x8x1xf32>
    %40 = vector.broadcast %39 : vector<2x8x1xf32> to vector<2x8x8xf32>
    %41 = arith.mulf %36, %40 : vector<2x8x8xf32>
    %42 = arith.truncf %41 : vector<2x8x8xf32> to vector<2x8x8xbf16>
    "tpu.trace_start"() <{level = 10 : i32, message = "bqk,bkd->bqd"}> : () -> ()
    %cst_19 = arith.constant dense<0.000000e+00> : vector<2x8x8xf32>
    %43 = tpu.matmul %42, %29, %cst_19 {dimension_numbers = #tpu.dot_dimension_numbers<[2], [1], [1], [2], [0, 0, 0, 1, 1, 2], [0], [0]>} : vector<2x8x8xbf16>, vector<2x8x8xbf16>, vector<2x8x8xf32> -> vector<2x8x8xf32>
    "tpu.trace_stop"() : () -> ()
    %44 = vector.shape_cast %43 : vector<2x8x8xf32> to vector<16x8xf32>
    %45 = arith.truncf %44 : vector<16x8xf32> to vector<16x8xbf16>
    %46 = vector.extract_strided_slice %13 {offsets = [0, 0], sizes = [8, 32], strides = [1, 1]} : vector<32x32xbf16> to vector<8x32xbf16>
    %cst_20 = arith.constant dense<0.000000e+00> : vector<16x32xf32>
    %47 = tpu.matmul %45, %46, %cst_20 {dimension_numbers = #tpu.dot_dimension_numbers<[1], [0], [0], [1], [0, 0, 1, 1], [], []>} : vector<16x8xbf16>, vector<8x32xbf16>, vector<16x32xf32> -> vector<16x32xf32>
    %48 = vector.broadcast %14 : vector<1x32xf32> to vector<16x32xf32>
    %49 = arith.addf %48, %47 : vector<16x32xf32>
    %50 = vector.shape_cast %41 : vector<2x8x8xf32> to vector<16x8xf32>
    %51 = vector.extract_strided_slice %23 {offsets = [0, 0, 8], sizes = [2, 8, 8], strides = [1, 1, 1]} : vector<2x8x32xbf16> to vector<2x8x8xbf16>
    %52 = vector.extract_strided_slice %26 {offsets = [0, 0, 8], sizes = [2, 8, 8], strides = [1, 1, 1]} : vector<2x8x64xbf16> to vector<2x8x8xbf16>
    %53 = vector.extract_strided_slice %26 {offsets = [0, 0, 40], sizes = [2, 8, 8], strides = [1, 1, 1]} : vector<2x8x64xbf16> to vector<2x8x8xbf16>
    "tpu.trace_start"() <{level = 10 : i32, message = "bqd,bkd->bqk"}> : () -> ()
    %cst_21 = arith.constant dense<0.000000e+00> : vector<2x8x8xf32>
    %54 = tpu.matmul %51, %52, %cst_21 {dimension_numbers = #tpu.dot_dimension_numbers<[2], [2], [1], [1], [0, 0, 0, 1, 1, 1], [0], [0]>} : vector<2x8x8xbf16>, vector<2x8x8xbf16>, vector<2x8x8xf32> -> vector<2x8x8xf32>
    "tpu.trace_stop"() : () -> ()
    %55 = arith.addf %54, %5 : vector<2x8x8xf32>
    %cst_22 = arith.constant dense<0xFF800000> : vector<2x8xf32>
    %56 = vector.multi_reduction <maximumf>, %55, %cst_22 [2] : vector<2x8x8xf32> to vector<2x8xf32>
    %57 = vector.shape_cast %56 : vector<2x8xf32> to vector<2x8x1xf32>
    %58 = vector.broadcast %57 : vector<2x8x1xf32> to vector<2x8x8xf32>
    %59 = arith.subf %55, %58 : vector<2x8x8xf32>
    %60 = math.exp %59 : vector<2x8x8xf32>
    %cst_23 = arith.constant dense<0.000000e+00> : vector<2x8xf32>
    %61 = vector.multi_reduction <add>, %60, %cst_23 [2] : vector<2x8x8xf32> to vector<2x8xf32>
    %62 = vector.shape_cast %61 : vector<2x8xf32> to vector<2x8x1xf32>
    %63 = tpu.reciprocal %62 : vector<2x8x1xf32> -> vector<2x8x1xf32>
    %64 = vector.broadcast %63 : vector<2x8x1xf32> to vector<2x8x8xf32>
    %65 = arith.mulf %60, %64 : vector<2x8x8xf32>
    %66 = arith.truncf %65 : vector<2x8x8xf32> to vector<2x8x8xbf16>
    "tpu.trace_start"() <{level = 10 : i32, message = "bqk,bkd->bqd"}> : () -> ()
    %cst_24 = arith.constant dense<0.000000e+00> : vector<2x8x8xf32>
    %67 = tpu.matmul %66, %53, %cst_24 {dimension_numbers = #tpu.dot_dimension_numbers<[2], [1], [1], [2], [0, 0, 0, 1, 1, 2], [0], [0]>} : vector<2x8x8xbf16>, vector<2x8x8xbf16>, vector<2x8x8xf32> -> vector<2x8x8xf32>
    "tpu.trace_stop"() : () -> ()
    %68 = vector.shape_cast %67 : vector<2x8x8xf32> to vector<16x8xf32>
    %69 = arith.truncf %68 : vector<16x8xf32> to vector<16x8xbf16>
    %70 = vector.extract_strided_slice %13 {offsets = [8, 0], sizes = [8, 32], strides = [1, 1]} : vector<32x32xbf16> to vector<8x32xbf16>
    %cst_25 = arith.constant dense<0.000000e+00> : vector<16x32xf32>
    %71 = tpu.matmul %69, %70, %cst_25 {dimension_numbers = #tpu.dot_dimension_numbers<[1], [0], [0], [1], [0, 0, 1, 1], [], []>} : vector<16x8xbf16>, vector<8x32xbf16>, vector<16x32xf32> -> vector<16x32xf32>
    %72 = arith.addf %49, %71 : vector<16x32xf32>
    %73 = vector.shape_cast %65 : vector<2x8x8xf32> to vector<16x8xf32>
    %74 = vector.extract_strided_slice %23 {offsets = [0, 0, 16], sizes = [2, 8, 8], strides = [1, 1, 1]} : vector<2x8x32xbf16> to vector<2x8x8xbf16>
    %75 = vector.extract_strided_slice %26 {offsets = [0, 0, 16], sizes = [2, 8, 8], strides = [1, 1, 1]} : vector<2x8x64xbf16> to vector<2x8x8xbf16>
    %76 = vector.extract_strided_slice %26 {offsets = [0, 0, 48], sizes = [2, 8, 8], strides = [1, 1, 1]} : vector<2x8x64xbf16> to vector<2x8x8xbf16>
    "tpu.trace_start"() <{level = 10 : i32, message = "bqd,bkd->bqk"}> : () -> ()
    %cst_26 = arith.constant dense<0.000000e+00> : vector<2x8x8xf32>
    %77 = tpu.matmul %74, %75, %cst_26 {dimension_numbers = #tpu.dot_dimension_numbers<[2], [2], [1], [1], [0, 0, 0, 1, 1, 1], [0], [0]>} : vector<2x8x8xbf16>, vector<2x8x8xbf16>, vector<2x8x8xf32> -> vector<2x8x8xf32>
    "tpu.trace_stop"() : () -> ()
    %78 = arith.addf %77, %5 : vector<2x8x8xf32>
    %cst_27 = arith.constant dense<0xFF800000> : vector<2x8xf32>
    %79 = vector.multi_reduction <maximumf>, %78, %cst_27 [2] : vector<2x8x8xf32> to vector<2x8xf32>
    %80 = vector.shape_cast %79 : vector<2x8xf32> to vector<2x8x1xf32>
    %81 = vector.broadcast %80 : vector<2x8x1xf32> to vector<2x8x8xf32>
    %82 = arith.subf %78, %81 : vector<2x8x8xf32>
    %83 = math.exp %82 : vector<2x8x8xf32>
    %cst_28 = arith.constant dense<0.000000e+00> : vector<2x8xf32>
    %84 = vector.multi_reduction <add>, %83, %cst_28 [2] : vector<2x8x8xf32> to vector<2x8xf32>
    %85 = vector.shape_cast %84 : vector<2x8xf32> to vector<2x8x1xf32>
    %86 = tpu.reciprocal %85 : vector<2x8x1xf32> -> vector<2x8x1xf32>
    %87 = vector.broadcast %86 : vector<2x8x1xf32> to vector<2x8x8xf32>
    %88 = arith.mulf %83, %87 : vector<2x8x8xf32>
    %89 = arith.truncf %88 : vector<2x8x8xf32> to vector<2x8x8xbf16>
    "tpu.trace_start"() <{level = 10 : i32, message = "bqk,bkd->bqd"}> : () -> ()
    %cst_29 = arith.constant dense<0.000000e+00> : vector<2x8x8xf32>
    %90 = tpu.matmul %89, %76, %cst_29 {dimension_numbers = #tpu.dot_dimension_numbers<[2], [1], [1], [2], [0, 0, 0, 1, 1, 2], [0], [0]>} : vector<2x8x8xbf16>, vector<2x8x8xbf16>, vector<2x8x8xf32> -> vector<2x8x8xf32>
    "tpu.trace_stop"() : () -> ()
    %91 = vector.shape_cast %90 : vector<2x8x8xf32> to vector<16x8xf32>
    %92 = arith.truncf %91 : vector<16x8xf32> to vector<16x8xbf16>
    %93 = vector.extract_strided_slice %13 {offsets = [16, 0], sizes = [8, 32], strides = [1, 1]} : vector<32x32xbf16> to vector<8x32xbf16>
    %cst_30 = arith.constant dense<0.000000e+00> : vector<16x32xf32>
    %94 = tpu.matmul %92, %93, %cst_30 {dimension_numbers = #tpu.dot_dimension_numbers<[1], [0], [0], [1], [0, 0, 1, 1], [], []>} : vector<16x8xbf16>, vector<8x32xbf16>, vector<16x32xf32> -> vector<16x32xf32>
    %95 = arith.addf %72, %94 : vector<16x32xf32>
    %96 = vector.shape_cast %88 : vector<2x8x8xf32> to vector<16x8xf32>
    %97 = vector.extract_strided_slice %23 {offsets = [0, 0, 24], sizes = [2, 8, 8], strides = [1, 1, 1]} : vector<2x8x32xbf16> to vector<2x8x8xbf16>
    %98 = vector.extract_strided_slice %26 {offsets = [0, 0, 24], sizes = [2, 8, 8], strides = [1, 1, 1]} : vector<2x8x64xbf16> to vector<2x8x8xbf16>
    %99 = vector.extract_strided_slice %26 {offsets = [0, 0, 56], sizes = [2, 8, 8], strides = [1, 1, 1]} : vector<2x8x64xbf16> to vector<2x8x8xbf16>
    "tpu.trace_start"() <{level = 10 : i32, message = "bqd,bkd->bqk"}> : () -> ()
    %cst_31 = arith.constant dense<0.000000e+00> : vector<2x8x8xf32>
    %100 = tpu.matmul %97, %98, %cst_31 {dimension_numbers = #tpu.dot_dimension_numbers<[2], [2], [1], [1], [0, 0, 0, 1, 1, 1], [0], [0]>} : vector<2x8x8xbf16>, vector<2x8x8xbf16>, vector<2x8x8xf32> -> vector<2x8x8xf32>
    "tpu.trace_stop"() : () -> ()
    %101 = arith.addf %100, %5 : vector<2x8x8xf32>
    %cst_32 = arith.constant dense<0xFF800000> : vector<2x8xf32>
    %102 = vector.multi_reduction <maximumf>, %101, %cst_32 [2] : vector<2x8x8xf32> to vector<2x8xf32>
    %103 = vector.shape_cast %102 : vector<2x8xf32> to vector<2x8x1xf32>
    %104 = vector.broadcast %103 : vector<2x8x1xf32> to vector<2x8x8xf32>
    %105 = arith.subf %101, %104 : vector<2x8x8xf32>
    %106 = math.exp %105 : vector<2x8x8xf32>
    %cst_33 = arith.constant dense<0.000000e+00> : vector<2x8xf32>
    %107 = vector.multi_reduction <add>, %106, %cst_33 [2] : vector<2x8x8xf32> to vector<2x8xf32>
    %108 = vector.shape_cast %107 : vector<2x8xf32> to vector<2x8x1xf32>
    %109 = tpu.reciprocal %108 : vector<2x8x1xf32> -> vector<2x8x1xf32>
    %110 = vector.broadcast %109 : vector<2x8x1xf32> to vector<2x8x8xf32>
    %111 = arith.mulf %106, %110 : vector<2x8x8xf32>
    %112 = arith.truncf %111 : vector<2x8x8xf32> to vector<2x8x8xbf16>
    "tpu.trace_start"() <{level = 10 : i32, message = "bqk,bkd->bqd"}> : () -> ()
    %cst_34 = arith.constant dense<0.000000e+00> : vector<2x8x8xf32>
    %113 = tpu.matmul %112, %99, %cst_34 {dimension_numbers = #tpu.dot_dimension_numbers<[2], [1], [1], [2], [0, 0, 0, 1, 1, 2], [0], [0]>} : vector<2x8x8xbf16>, vector<2x8x8xbf16>, vector<2x8x8xf32> -> vector<2x8x8xf32>
    "tpu.trace_stop"() : () -> ()
    %114 = vector.shape_cast %113 : vector<2x8x8xf32> to vector<16x8xf32>
    %115 = arith.truncf %114 : vector<16x8xf32> to vector<16x8xbf16>
    %116 = vector.extract_strided_slice %13 {offsets = [24, 0], sizes = [8, 32], strides = [1, 1]} : vector<32x32xbf16> to vector<8x32xbf16>
    %cst_35 = arith.constant dense<0.000000e+00> : vector<16x32xf32>
    %117 = tpu.matmul %115, %116, %cst_35 {dimension_numbers = #tpu.dot_dimension_numbers<[1], [0], [0], [1], [0, 0, 1, 1], [], []>} : vector<16x8xbf16>, vector<8x32xbf16>, vector<16x32xf32> -> vector<16x32xf32>
    %118 = arith.addf %95, %117 : vector<16x32xf32>
    %119 = vector.shape_cast %111 : vector<2x8x8xf32> to vector<16x8xf32>
    %120 = arith.addf %118, %0 : vector<16x32xf32>
    %cst_36 = arith.constant dense<0.000000e+00> : vector<16xf32>
    %121 = vector.multi_reduction <add>, %120, %cst_36 [1] : vector<16x32xf32> to vector<16xf32>
    %122 = vector.shape_cast %121 : vector<16xf32> to vector<16x1xf32>
    %cst_37 = arith.constant 3.200000e+01 : f32
    %123 = vector.broadcast %cst_37 : f32 to vector<16x1xf32>
    %124 = arith.divf %122, %123 : vector<16x1xf32>
    %125 = vector.broadcast %124 : vector<16x1xf32> to vector<16x32xf32>
    %126 = arith.subf %120, %125 : vector<16x32xf32>
    %127 = arith.mulf %126, %126 : vector<16x32xf32>
    %cst_38 = arith.constant dense<0.000000e+00> : vector<16xf32>
    %128 = vector.multi_reduction <add>, %127, %cst_38 [1] : vector<16x32xf32> to vector<16xf32>
    %129 = vector.shape_cast %128 : vector<16xf32> to vector<16x1xf32>
    %cst_39 = arith.constant 3.200000e+01 : f32
    %130 = vector.broadcast %cst_39 : f32 to vector<16x1xf32>
    %131 = arith.divf %129, %130 : vector<16x1xf32>
    %cst_40 = arith.constant 9.99999974E-6 : f32
    %132 = vector.broadcast %cst_40 : f32 to vector<16x1xf32>
    %133 = arith.addf %131, %132 : vector<16x1xf32>
    %134 = math.rsqrt %133 : vector<16x1xf32>
    %135 = vector.broadcast %134 : vector<16x1xf32> to vector<16x32xf32>
    %136 = arith.mulf %126, %135 : vector<16x32xf32>
    %137 = vector.broadcast %15 : vector<1x32xf32> to vector<16x32xf32>
    %138 = arith.mulf %136, %137 : vector<16x32xf32>
    %139 = vector.broadcast %16 : vector<1x32xf32> to vector<16x32xf32>
    %140 = arith.addf %138, %139 : vector<16x32xf32>
    %c0_41 = arith.constant 0 : index
    %c128 = arith.constant 128 : index
    %141 = vector.load %arg4[%c0_41, %c128] : memref<32x384xbf16, #tpu.memory_space<vmem>>, vector<32x96xbf16>
    %142 = vector.extract_strided_slice %10 {offsets = [4, 0], sizes = [1, 96], strides = [1, 1]} : vector<16x128xf32> to vector<1x96xf32>
    %c0_42 = arith.constant 0 : index
    %c352 = arith.constant 352 : index
    %143 = vector.load %arg4[%c0_42, %c352] : memref<32x384xbf16, #tpu.memory_space<vmem>>, vector<32x32xbf16>
    %144 = vector.extract_strided_slice %10 {offsets = [5, 0], sizes = [1, 32], strides = [1, 1]} : vector<16x128xf32> to vector<1x32xf32>
    %145 = vector.extract_strided_slice %10 {offsets = [6, 0], sizes = [1, 32], strides = [1, 1]} : vector<16x128xf32> to vector<1x32xf32>
    %146 = vector.extract_strided_slice %10 {offsets = [7, 0], sizes = [1, 32], strides = [1, 1]} : vector<16x128xf32> to vector<1x32xf32>
    %147 = arith.truncf %140 : vector<16x32xf32> to vector<16x32xbf16>
    %cst_43 = arith.constant dense<0.000000e+00> : vector<16x96xf32>
    %148 = tpu.matmul %147, %141, %cst_43 {dimension_numbers = #tpu.dot_dimension_numbers<[1], [0], [0], [1], [0, 0, 1, 1], [], []>} : vector<16x32xbf16>, vector<32x96xbf16>, vector<16x96xf32> -> vector<16x96xf32>
    %149 = vector.broadcast %142 : vector<1x96xf32> to vector<16x96xf32>
    %150 = arith.addf %148, %149 : vector<16x96xf32>
    %151 = arith.truncf %1 : vector<16x32xf32> to vector<16x32xbf16>
    %cst_44 = arith.constant dense<0.000000e+00> : vector<16x96xf32>
    %152 = tpu.matmul %151, %141, %cst_44 {dimension_numbers = #tpu.dot_dimension_numbers<[1], [0], [0], [1], [0, 0, 1, 1], [], []>} : vector<16x32xbf16>, vector<32x96xbf16>, vector<16x96xf32> -> vector<16x96xf32>
    %153 = vector.broadcast %142 : vector<1x96xf32> to vector<16x96xf32>
    %154 = arith.addf %152, %153 : vector<16x96xf32>
    %155 = vector.extract_strided_slice %150 {offsets = [0, 0], sizes = [16, 32], strides = [1, 1]} : vector<16x96xf32> to vector<16x32xf32>
    %156 = vector.shape_cast %155 : vector<16x32xf32> to vector<2x8x32xf32>
    %157 = arith.truncf %156 : vector<2x8x32xf32> to vector<2x8x32xbf16>
    %158 = vector.extract_strided_slice %154 {offsets = [0, 32], sizes = [16, 64], strides = [1, 1]} : vector<16x96xf32> to vector<16x64xf32>
    %159 = vector.shape_cast %158 : vector<16x64xf32> to vector<2x8x64xf32>
    %160 = arith.truncf %159 : vector<2x8x64xf32> to vector<2x8x64xbf16>
    %161 = vector.extract_strided_slice %157 {offsets = [0, 0, 0], sizes = [2, 8, 8], strides = [1, 1, 1]} : vector<2x8x32xbf16> to vector<2x8x8xbf16>
    %162 = vector.extract_strided_slice %160 {offsets = [0, 0, 0], sizes = [2, 8, 8], strides = [1, 1, 1]} : vector<2x8x64xbf16> to vector<2x8x8xbf16>
    %163 = vector.extract_strided_slice %160 {offsets = [0, 0, 32], sizes = [2, 8, 8], strides = [1, 1, 1]} : vector<2x8x64xbf16> to vector<2x8x8xbf16>
    "tpu.trace_start"() <{level = 10 : i32, message = "bqd,bkd->bqk"}> : () -> ()
    %cst_45 = arith.constant dense<0.000000e+00> : vector<2x8x8xf32>
    %164 = tpu.matmul %161, %162, %cst_45 {dimension_numbers = #tpu.dot_dimension_numbers<[2], [2], [1], [1], [0, 0, 0, 1, 1, 1], [0], [0]>} : vector<2x8x8xbf16>, vector<2x8x8xbf16>, vector<2x8x8xf32> -> vector<2x8x8xf32>
    "tpu.trace_stop"() : () -> ()
    %165 = arith.addf %164, %9 : vector<2x8x8xf32>
    %cst_46 = arith.constant dense<0xFF800000> : vector<2x8xf32>
    %166 = vector.multi_reduction <maximumf>, %165, %cst_46 [2] : vector<2x8x8xf32> to vector<2x8xf32>
    %167 = vector.shape_cast %166 : vector<2x8xf32> to vector<2x8x1xf32>
    %168 = vector.broadcast %167 : vector<2x8x1xf32> to vector<2x8x8xf32>
    %169 = arith.subf %165, %168 : vector<2x8x8xf32>
    %170 = math.exp %169 : vector<2x8x8xf32>
    %cst_47 = arith.constant dense<0.000000e+00> : vector<2x8xf32>
    %171 = vector.multi_reduction <add>, %170, %cst_47 [2] : vector<2x8x8xf32> to vector<2x8xf32>
    %172 = vector.shape_cast %171 : vector<2x8xf32> to vector<2x8x1xf32>
    %173 = tpu.reciprocal %172 : vector<2x8x1xf32> -> vector<2x8x1xf32>
    %174 = vector.broadcast %173 : vector<2x8x1xf32> to vector<2x8x8xf32>
    %175 = arith.mulf %170, %174 : vector<2x8x8xf32>
    %176 = arith.truncf %175 : vector<2x8x8xf32> to vector<2x8x8xbf16>
    "tpu.trace_start"() <{level = 10 : i32, message = "bqk,bkd->bqd"}> : () -> ()
    %cst_48 = arith.constant dense<0.000000e+00> : vector<2x8x8xf32>
    %177 = tpu.matmul %176, %163, %cst_48 {dimension_numbers = #tpu.dot_dimension_numbers<[2], [1], [1], [2], [0, 0, 0, 1, 1, 2], [0], [0]>} : vector<2x8x8xbf16>, vector<2x8x8xbf16>, vector<2x8x8xf32> -> vector<2x8x8xf32>
    "tpu.trace_stop"() : () -> ()
    %178 = vector.shape_cast %177 : vector<2x8x8xf32> to vector<16x8xf32>
    %179 = arith.truncf %178 : vector<16x8xf32> to vector<16x8xbf16>
    %180 = vector.extract_strided_slice %143 {offsets = [0, 0], sizes = [8, 32], strides = [1, 1]} : vector<32x32xbf16> to vector<8x32xbf16>
    %cst_49 = arith.constant dense<0.000000e+00> : vector<16x32xf32>
    %181 = tpu.matmul %179, %180, %cst_49 {dimension_numbers = #tpu.dot_dimension_numbers<[1], [0], [0], [1], [0, 0, 1, 1], [], []>} : vector<16x8xbf16>, vector<8x32xbf16>, vector<16x32xf32> -> vector<16x32xf32>
    %182 = vector.broadcast %144 : vector<1x32xf32> to vector<16x32xf32>
    %183 = arith.addf %182, %181 : vector<16x32xf32>
    %184 = vector.shape_cast %175 : vector<2x8x8xf32> to vector<16x8xf32>
    %185 = vector.extract_strided_slice %157 {offsets = [0, 0, 8], sizes = [2, 8, 8], strides = [1, 1, 1]} : vector<2x8x32xbf16> to vector<2x8x8xbf16>
    %186 = vector.extract_strided_slice %160 {offsets = [0, 0, 8], sizes = [2, 8, 8], strides = [1, 1, 1]} : vector<2x8x64xbf16> to vector<2x8x8xbf16>
    %187 = vector.extract_strided_slice %160 {offsets = [0, 0, 40], sizes = [2, 8, 8], strides = [1, 1, 1]} : vector<2x8x64xbf16> to vector<2x8x8xbf16>
    "tpu.trace_start"() <{level = 10 : i32, message = "bqd,bkd->bqk"}> : () -> ()
    %cst_50 = arith.constant dense<0.000000e+00> : vector<2x8x8xf32>
    %188 = tpu.matmul %185, %186, %cst_50 {dimension_numbers = #tpu.dot_dimension_numbers<[2], [2], [1], [1], [0, 0, 0, 1, 1, 1], [0], [0]>} : vector<2x8x8xbf16>, vector<2x8x8xbf16>, vector<2x8x8xf32> -> vector<2x8x8xf32>
    "tpu.trace_stop"() : () -> ()
    %189 = arith.addf %188, %9 : vector<2x8x8xf32>
    %cst_51 = arith.constant dense<0xFF800000> : vector<2x8xf32>
    %190 = vector.multi_reduction <maximumf>, %189, %cst_51 [2] : vector<2x8x8xf32> to vector<2x8xf32>
    %191 = vector.shape_cast %190 : vector<2x8xf32> to vector<2x8x1xf32>
    %192 = vector.broadcast %191 : vector<2x8x1xf32> to vector<2x8x8xf32>
    %193 = arith.subf %189, %192 : vector<2x8x8xf32>
    %194 = math.exp %193 : vector<2x8x8xf32>
    %cst_52 = arith.constant dense<0.000000e+00> : vector<2x8xf32>
    %195 = vector.multi_reduction <add>, %194, %cst_52 [2] : vector<2x8x8xf32> to vector<2x8xf32>
    %196 = vector.shape_cast %195 : vector<2x8xf32> to vector<2x8x1xf32>
    %197 = tpu.reciprocal %196 : vector<2x8x1xf32> -> vector<2x8x1xf32>
    %198 = vector.broadcast %197 : vector<2x8x1xf32> to vector<2x8x8xf32>
    %199 = arith.mulf %194, %198 : vector<2x8x8xf32>
    %200 = arith.truncf %199 : vector<2x8x8xf32> to vector<2x8x8xbf16>
    "tpu.trace_start"() <{level = 10 : i32, message = "bqk,bkd->bqd"}> : () -> ()
    %cst_53 = arith.constant dense<0.000000e+00> : vector<2x8x8xf32>
    %201 = tpu.matmul %200, %187, %cst_53 {dimension_numbers = #tpu.dot_dimension_numbers<[2], [1], [1], [2], [0, 0, 0, 1, 1, 2], [0], [0]>} : vector<2x8x8xbf16>, vector<2x8x8xbf16>, vector<2x8x8xf32> -> vector<2x8x8xf32>
    "tpu.trace_stop"() : () -> ()
    %202 = vector.shape_cast %201 : vector<2x8x8xf32> to vector<16x8xf32>
    %203 = arith.truncf %202 : vector<16x8xf32> to vector<16x8xbf16>
    %204 = vector.extract_strided_slice %143 {offsets = [8, 0], sizes = [8, 32], strides = [1, 1]} : vector<32x32xbf16> to vector<8x32xbf16>
    %cst_54 = arith.constant dense<0.000000e+00> : vector<16x32xf32>
    %205 = tpu.matmul %203, %204, %cst_54 {dimension_numbers = #tpu.dot_dimension_numbers<[1], [0], [0], [1], [0, 0, 1, 1], [], []>} : vector<16x8xbf16>, vector<8x32xbf16>, vector<16x32xf32> -> vector<16x32xf32>
    %206 = arith.addf %183, %205 : vector<16x32xf32>
    %207 = vector.shape_cast %199 : vector<2x8x8xf32> to vector<16x8xf32>
    %208 = vector.extract_strided_slice %157 {offsets = [0, 0, 16], sizes = [2, 8, 8], strides = [1, 1, 1]} : vector<2x8x32xbf16> to vector<2x8x8xbf16>
    %209 = vector.extract_strided_slice %160 {offsets = [0, 0, 16], sizes = [2, 8, 8], strides = [1, 1, 1]} : vector<2x8x64xbf16> to vector<2x8x8xbf16>
    %210 = vector.extract_strided_slice %160 {offsets = [0, 0, 48], sizes = [2, 8, 8], strides = [1, 1, 1]} : vector<2x8x64xbf16> to vector<2x8x8xbf16>
    "tpu.trace_start"() <{level = 10 : i32, message = "bqd,bkd->bqk"}> : () -> ()
    %cst_55 = arith.constant dense<0.000000e+00> : vector<2x8x8xf32>
    %211 = tpu.matmul %208, %209, %cst_55 {dimension_numbers = #tpu.dot_dimension_numbers<[2], [2], [1], [1], [0, 0, 0, 1, 1, 1], [0], [0]>} : vector<2x8x8xbf16>, vector<2x8x8xbf16>, vector<2x8x8xf32> -> vector<2x8x8xf32>
    "tpu.trace_stop"() : () -> ()
    %212 = arith.addf %211, %9 : vector<2x8x8xf32>
    %cst_56 = arith.constant dense<0xFF800000> : vector<2x8xf32>
    %213 = vector.multi_reduction <maximumf>, %212, %cst_56 [2] : vector<2x8x8xf32> to vector<2x8xf32>
    %214 = vector.shape_cast %213 : vector<2x8xf32> to vector<2x8x1xf32>
    %215 = vector.broadcast %214 : vector<2x8x1xf32> to vector<2x8x8xf32>
    %216 = arith.subf %212, %215 : vector<2x8x8xf32>
    %217 = math.exp %216 : vector<2x8x8xf32>
    %cst_57 = arith.constant dense<0.000000e+00> : vector<2x8xf32>
    %218 = vector.multi_reduction <add>, %217, %cst_57 [2] : vector<2x8x8xf32> to vector<2x8xf32>
    %219 = vector.shape_cast %218 : vector<2x8xf32> to vector<2x8x1xf32>
    %220 = tpu.reciprocal %219 : vector<2x8x1xf32> -> vector<2x8x1xf32>
    %221 = vector.broadcast %220 : vector<2x8x1xf32> to vector<2x8x8xf32>
    %222 = arith.mulf %217, %221 : vector<2x8x8xf32>
    %223 = arith.truncf %222 : vector<2x8x8xf32> to vector<2x8x8xbf16>
    "tpu.trace_start"() <{level = 10 : i32, message = "bqk,bkd->bqd"}> : () -> ()
    %cst_58 = arith.constant dense<0.000000e+00> : vector<2x8x8xf32>
    %224 = tpu.matmul %223, %210, %cst_58 {dimension_numbers = #tpu.dot_dimension_numbers<[2], [1], [1], [2], [0, 0, 0, 1, 1, 2], [0], [0]>} : vector<2x8x8xbf16>, vector<2x8x8xbf16>, vector<2x8x8xf32> -> vector<2x8x8xf32>
    "tpu.trace_stop"() : () -> ()
    %225 = vector.shape_cast %224 : vector<2x8x8xf32> to vector<16x8xf32>
    %226 = arith.truncf %225 : vector<16x8xf32> to vector<16x8xbf16>
    %227 = vector.extract_strided_slice %143 {offsets = [16, 0], sizes = [8, 32], strides = [1, 1]} : vector<32x32xbf16> to vector<8x32xbf16>
    %cst_59 = arith.constant dense<0.000000e+00> : vector<16x32xf32>
    %228 = tpu.matmul %226, %227, %cst_59 {dimension_numbers = #tpu.dot_dimension_numbers<[1], [0], [0], [1], [0, 0, 1, 1], [], []>} : vector<16x8xbf16>, vector<8x32xbf16>, vector<16x32xf32> -> vector<16x32xf32>
    %229 = arith.addf %206, %228 : vector<16x32xf32>
    %230 = vector.shape_cast %222 : vector<2x8x8xf32> to vector<16x8xf32>
    %231 = vector.extract_strided_slice %157 {offsets = [0, 0, 24], sizes = [2, 8, 8], strides = [1, 1, 1]} : vector<2x8x32xbf16> to vector<2x8x8xbf16>
    %232 = vector.extract_strided_slice %160 {offsets = [0, 0, 24], sizes = [2, 8, 8], strides = [1, 1, 1]} : vector<2x8x64xbf16> to vector<2x8x8xbf16>
    %233 = vector.extract_strided_slice %160 {offsets = [0, 0, 56], sizes = [2, 8, 8], strides = [1, 1, 1]} : vector<2x8x64xbf16> to vector<2x8x8xbf16>
    "tpu.trace_start"() <{level = 10 : i32, message = "bqd,bkd->bqk"}> : () -> ()
    %cst_60 = arith.constant dense<0.000000e+00> : vector<2x8x8xf32>
    %234 = tpu.matmul %231, %232, %cst_60 {dimension_numbers = #tpu.dot_dimension_numbers<[2], [2], [1], [1], [0, 0, 0, 1, 1, 1], [0], [0]>} : vector<2x8x8xbf16>, vector<2x8x8xbf16>, vector<2x8x8xf32> -> vector<2x8x8xf32>
    "tpu.trace_stop"() : () -> ()
    %235 = arith.addf %234, %9 : vector<2x8x8xf32>
    %cst_61 = arith.constant dense<0xFF800000> : vector<2x8xf32>
    %236 = vector.multi_reduction <maximumf>, %235, %cst_61 [2] : vector<2x8x8xf32> to vector<2x8xf32>
    %237 = vector.shape_cast %236 : vector<2x8xf32> to vector<2x8x1xf32>
    %238 = vector.broadcast %237 : vector<2x8x1xf32> to vector<2x8x8xf32>
    %239 = arith.subf %235, %238 : vector<2x8x8xf32>
    %240 = math.exp %239 : vector<2x8x8xf32>
    %cst_62 = arith.constant dense<0.000000e+00> : vector<2x8xf32>
    %241 = vector.multi_reduction <add>, %240, %cst_62 [2] : vector<2x8x8xf32> to vector<2x8xf32>
    %242 = vector.shape_cast %241 : vector<2x8xf32> to vector<2x8x1xf32>
    %243 = tpu.reciprocal %242 : vector<2x8x1xf32> -> vector<2x8x1xf32>
    %244 = vector.broadcast %243 : vector<2x8x1xf32> to vector<2x8x8xf32>
    %245 = arith.mulf %240, %244 : vector<2x8x8xf32>
    %246 = arith.truncf %245 : vector<2x8x8xf32> to vector<2x8x8xbf16>
    "tpu.trace_start"() <{level = 10 : i32, message = "bqk,bkd->bqd"}> : () -> ()
    %cst_63 = arith.constant dense<0.000000e+00> : vector<2x8x8xf32>
    %247 = tpu.matmul %246, %233, %cst_63 {dimension_numbers = #tpu.dot_dimension_numbers<[2], [1], [1], [2], [0, 0, 0, 1, 1, 2], [0], [0]>} : vector<2x8x8xbf16>, vector<2x8x8xbf16>, vector<2x8x8xf32> -> vector<2x8x8xf32>
    "tpu.trace_stop"() : () -> ()
    %248 = vector.shape_cast %247 : vector<2x8x8xf32> to vector<16x8xf32>
    %249 = arith.truncf %248 : vector<16x8xf32> to vector<16x8xbf16>
    %250 = vector.extract_strided_slice %143 {offsets = [24, 0], sizes = [8, 32], strides = [1, 1]} : vector<32x32xbf16> to vector<8x32xbf16>
    %cst_64 = arith.constant dense<0.000000e+00> : vector<16x32xf32>
    %251 = tpu.matmul %249, %250, %cst_64 {dimension_numbers = #tpu.dot_dimension_numbers<[1], [0], [0], [1], [0, 0, 1, 1], [], []>} : vector<16x8xbf16>, vector<8x32xbf16>, vector<16x32xf32> -> vector<16x32xf32>
    %252 = arith.addf %229, %251 : vector<16x32xf32>
    %253 = vector.shape_cast %245 : vector<2x8x8xf32> to vector<16x8xf32>
    %254 = arith.addf %252, %140 : vector<16x32xf32>
    %cst_65 = arith.constant dense<0.000000e+00> : vector<16xf32>
    %255 = vector.multi_reduction <add>, %254, %cst_65 [1] : vector<16x32xf32> to vector<16xf32>
    %256 = vector.shape_cast %255 : vector<16xf32> to vector<16x1xf32>
    %cst_66 = arith.constant 3.200000e+01 : f32
    %257 = vector.broadcast %cst_66 : f32 to vector<16x1xf32>
    %258 = arith.divf %256, %257 : vector<16x1xf32>
    %259 = vector.broadcast %258 : vector<16x1xf32> to vector<16x32xf32>
    %260 = arith.subf %254, %259 : vector<16x32xf32>
    %261 = arith.mulf %260, %260 : vector<16x32xf32>
    %cst_67 = arith.constant dense<0.000000e+00> : vector<16xf32>
    %262 = vector.multi_reduction <add>, %261, %cst_67 [1] : vector<16x32xf32> to vector<16xf32>
    %263 = vector.shape_cast %262 : vector<16xf32> to vector<16x1xf32>
    %cst_68 = arith.constant 3.200000e+01 : f32
    %264 = vector.broadcast %cst_68 : f32 to vector<16x1xf32>
    %265 = arith.divf %263, %264 : vector<16x1xf32>
    %cst_69 = arith.constant 9.99999974E-6 : f32
    %266 = vector.broadcast %cst_69 : f32 to vector<16x1xf32>
    %267 = arith.addf %265, %266 : vector<16x1xf32>
    %268 = math.rsqrt %267 : vector<16x1xf32>
    %269 = vector.broadcast %268 : vector<16x1xf32> to vector<16x32xf32>
    %270 = arith.mulf %260, %269 : vector<16x32xf32>
    %271 = vector.broadcast %145 : vector<1x32xf32> to vector<16x32xf32>
    %272 = arith.mulf %270, %271 : vector<16x32xf32>
    %273 = vector.broadcast %146 : vector<1x32xf32> to vector<16x32xf32>
    %274 = arith.addf %272, %273 : vector<16x32xf32>
    %c0_70 = arith.constant 0 : index
    %c256 = arith.constant 256 : index
    %275 = vector.load %arg4[%c0_70, %c256] : memref<32x384xbf16, #tpu.memory_space<vmem>>, vector<32x64xbf16>
    %276 = vector.extract_strided_slice %10 {offsets = [8, 0], sizes = [1, 64], strides = [1, 1]} : vector<16x128xf32> to vector<1x64xf32>
    %c0_71 = arith.constant 0 : index
    %c0_72 = arith.constant 0 : index
    %277 = vector.load %arg5[%c0_71, %c0_72] : memref<64x32xbf16, #tpu.memory_space<vmem>>, vector<64x32xbf16>
    %278 = vector.extract_strided_slice %10 {offsets = [9, 0], sizes = [1, 32], strides = [1, 1]} : vector<16x128xf32> to vector<1x32xf32>
    %279 = vector.extract_strided_slice %10 {offsets = [10, 0], sizes = [1, 32], strides = [1, 1]} : vector<16x128xf32> to vector<1x32xf32>
    %280 = vector.extract_strided_slice %10 {offsets = [11, 0], sizes = [1, 32], strides = [1, 1]} : vector<16x128xf32> to vector<1x32xf32>
    %281 = arith.truncf %274 : vector<16x32xf32> to vector<16x32xbf16>
    %cst_73 = arith.constant dense<0.000000e+00> : vector<16x64xf32>
    %282 = tpu.matmul %281, %275, %cst_73 {dimension_numbers = #tpu.dot_dimension_numbers<[1], [0], [0], [1], [0, 0, 1, 1], [], []>} : vector<16x32xbf16>, vector<32x64xbf16>, vector<16x64xf32> -> vector<16x64xf32>
    %283 = vector.broadcast %276 : vector<1x64xf32> to vector<16x64xf32>
    %284 = arith.addf %282, %283 : vector<16x64xf32>
    %cst_74 = arith.constant 0.000000e+00 : f32
    %285 = vector.broadcast %cst_74 : f32 to vector<16x64xf32>
    %286 = arith.maximumf %284, %285 : vector<16x64xf32>
    %287 = arith.truncf %286 : vector<16x64xf32> to vector<16x64xbf16>
    %cst_75 = arith.constant dense<0.000000e+00> : vector<16x32xf32>
    %288 = tpu.matmul %287, %277, %cst_75 {dimension_numbers = #tpu.dot_dimension_numbers<[1], [0], [0], [1], [0, 0, 1, 1], [], []>} : vector<16x64xbf16>, vector<64x32xbf16>, vector<16x32xf32> -> vector<16x32xf32>
    %289 = vector.broadcast %278 : vector<1x32xf32> to vector<16x32xf32>
    %290 = arith.addf %288, %289 : vector<16x32xf32>
    %291 = arith.addf %290, %274 : vector<16x32xf32>
    %cst_76 = arith.constant dense<0.000000e+00> : vector<16xf32>
    %292 = vector.multi_reduction <add>, %291, %cst_76 [1] : vector<16x32xf32> to vector<16xf32>
    %293 = vector.shape_cast %292 : vector<16xf32> to vector<16x1xf32>
    %cst_77 = arith.constant 3.200000e+01 : f32
    %294 = vector.broadcast %cst_77 : f32 to vector<16x1xf32>
    %295 = arith.divf %293, %294 : vector<16x1xf32>
    %296 = vector.broadcast %295 : vector<16x1xf32> to vector<16x32xf32>
    %297 = arith.subf %291, %296 : vector<16x32xf32>
    %298 = arith.mulf %297, %297 : vector<16x32xf32>
    %cst_78 = arith.constant dense<0.000000e+00> : vector<16xf32>
    %299 = vector.multi_reduction <add>, %298, %cst_78 [1] : vector<16x32xf32> to vector<16xf32>
    %300 = vector.shape_cast %299 : vector<16xf32> to vector<16x1xf32>
    %cst_79 = arith.constant 3.200000e+01 : f32
    %301 = vector.broadcast %cst_79 : f32 to vector<16x1xf32>
    %302 = arith.divf %300, %301 : vector<16x1xf32>
    %cst_80 = arith.constant 9.99999974E-6 : f32
    %303 = vector.broadcast %cst_80 : f32 to vector<16x1xf32>
    %304 = arith.addf %302, %303 : vector<16x1xf32>
    %305 = math.rsqrt %304 : vector<16x1xf32>
    %306 = vector.broadcast %305 : vector<16x1xf32> to vector<16x32xf32>
    %307 = arith.mulf %297, %306 : vector<16x32xf32>
    %308 = vector.broadcast %279 : vector<1x32xf32> to vector<16x32xf32>
    %309 = arith.mulf %307, %308 : vector<16x32xf32>
    %310 = vector.broadcast %280 : vector<1x32xf32> to vector<16x32xf32>
    %311 = arith.addf %309, %310 : vector<16x32xf32>
    %cst_81 = arith.constant 0.000000e+00 : f32
    %312 = vector.broadcast %cst_81 : f32 to vector<16x32xf32>
    %313 = tpu.concatenate %311, %50, %73, %96, %119, %184, %207, %230, %253, %312 in 1 : vector<16x32xf32>, vector<16x8xf32>, vector<16x8xf32>, vector<16x8xf32>, vector<16x8xf32>, vector<16x8xf32>, vector<16x8xf32>, vector<16x8xf32>, vector<16x8xf32>, vector<16x32xf32> -> vector<16x128xf32>
    %c0_82 = arith.constant 0 : index
    %c0_83 = arith.constant 0 : index
    %314 = vector.load %arg7[%c0_82, %c0_83] : memref<16x128xf32, #tpu.memory_space<vmem>>, vector<16x128xf32>
    tpu.vector_store %arg7[%c0_82, %c0_83], %313 {strides = array<i32>} : memref<16x128xf32, #tpu.memory_space<vmem>>, vector<16x128xf32>,
    return
  }
}

</mosaic_0001>

<bundles_post_ra>
// kernel: decoder_layer_forward.1
= control target key start
LH: loop header
LB: loop body
LE: loop exit
PB: predicated region body
PF: predicated region fallthrough
CT: control target
= control target key end

     0   :  { %12 = vsyncpa [#allocation3], 0  ;;  %s4322_s0 = inlined_call_operand.vmem [shape: f32[16,32], index: 0, kind: input, shape index: {}]   ;;  %s4323_s1 = inlined_call_operand.hbm [shape: f32[16,32], index: 1, kind: input, shape index: {}]   ;;  %s4324_s2 = inlined_call_operand.hbm [shape: s32[2,8,8], index: 2, kind: input, shape index: {}]   ;;  %s4325_s3 = inlined_call_operand.hbm [shape: s32[2,8,8], index: 3, kind: input, shape index: {}]   ;;  %s4326_s4 = inlined_call_operand.vmem [shape: bf16[32,384], index: 4, kind: input, shape index: {}]   ;;  %s4327_s5 = inlined_call_operand.vmem [shape: bf16[64,32], index: 5, kind: input, shape index: {}]   ;;  %s4328_s6 = inlined_call_operand.hbm [shape: f32[16,128], index: 6, kind: input, shape index: {}]   ;;  %s4329_s7 = inlined_call_operand.vmem [shape: f32[16,128], index: 7, kind: output, shape index: {}]  }
   0x1   :  { %13 = vsyncpa [#allocation5], 0 }
   0x2   :  { %14 = vsyncpa [#allocation8], 0  ;;  %s3519_s24 = smov [#allocation4]   ;;  %s3520_s26 = smov [#allocation2]  }
   0x3   :  { %s34_s25 = sshll.u32 %s3519_s24, 4  ;;  %s22_s27 = sshll.u32 %s3520_s26, 4  ;;  %s35_s25 = int_to_ptr.vmem [resolvable:$true] %s34_s25  ;;  %s3579_s27 = int_to_ptr.vmem [resolvable:$true] %s22_s27 }
   0x4   :  { %s3425_s30 = scalar_lea.hbm %s4324_s2, 256 }
   0x5   :  { %p3426_p0 = scmp.ne.s32.totalorder %s4324_s2, %s3425_s30  ;;  %p3429_p1 = scmp.lt.u32.totalorder %s3425_s30, %s4324_s2 }
   0x7   :  { %p3431_p2 = pnand %p3429_p1, %p3426_p0 }
   0x9   :  { %3434 = shalt.err (!%p3431_p2)
}
   0xa   :  { %s3435_s12 = scalar_lea.vmem %s35_s25, 256  ;;  %p3440_p4 = scmp.lt.s32.totalorder %s35_s25, %s35_s25 }
   0xb   :  { %p3436_p3 = scmp.ne.s32.totalorder %s35_s25, %s3435_s12  ;;  %p3441_p5 = scmp.lt.s32.totalorder %s3435_s12, %s3435_s12 }
   0xd   :  { %p3442_p6 = por %p3441_p5, %p3440_p4 }
   0xf   :  { %p3443_p7 = pnand %p3442_p6, %p3436_p3 }
  0x11   :  { %3446 = shalt.err (!%p3443_p7)
}
  0x12   :  { %s3521_s13 = smov 128   ;;  %s3522_s14 = smov 8  }
  0x13   :  { %40 = dma.hbm_to_vmem [thread:$0]  %s4324_s2, 256, %s35_s25, [#allocation5], %s3521_s13, %s3521_s13, %s3522_s14  }
  0x14   :  { %s3447_s19 = scalar_lea.hbm %s4323_s1, 256 }
  0x15   :  { %p3448_p8 = scmp.ne.s32.totalorder %s4323_s1, %s3447_s19  ;;  %p3451_p9 = scmp.lt.u32.totalorder %s3447_s19, %s4323_s1 }
  0x17   :  { %p3453_p10 = pnand %p3451_p9, %p3448_p8 }
  0x19   :  { %3456 = shalt.err (!%p3453_p10)
}
  0x1a   :  { %s3457_s24 = scalar_lea.vmem %s3579_s27, 256  ;;  %p3462_p12 = scmp.lt.s32.totalorder %s3579_s27, %s3579_s27 }
  0x1b   :  { %p3458_p11 = scmp.ne.s32.totalorder %s3579_s27, %s3457_s24  ;;  %p3463_p13 = scmp.lt.s32.totalorder %s3457_s24, %s3457_s24 }
  0x1d   :  { %p3464_p0 = por %p3463_p13, %p3462_p12 }
  0x1f   :  { %p3465_p1 = pnand %p3464_p0, %p3458_p11 }
  0x21   :  { %3468 = shalt.err (!%p3465_p1)
}
  0x22   :  { %28 = dma.hbm_to_vmem [thread:$0]  %s4323_s1, 256, %s3579_s27, [#allocation3], %s3521_s13, %s3521_s13, %s3522_s14  }
  0x23   :  { %s3523_s26 = smov [#allocation6]   ;;  %s3524_s29 = smov [#allocation7]  }
  0x24   :  { %s46_s28 = sshll.u32 %s3523_s26, 4  ;;  %s62_s30 = sshll.u32 %s3524_s29, 4  ;;  %s47_s28 = int_to_ptr.vmem [resolvable:$true] %s46_s28  ;;  %s3616_s30 = int_to_ptr.vmem [resolvable:$true] %s62_s30 }
  0x25   :  { %s3469_s10 = scalar_lea.hbm %s4325_s3, 256 }
  0x26   :  { %p3470_p2 = scmp.ne.s32.totalorder %s4325_s3, %s3469_s10  ;;  %p3473_p3 = scmp.lt.u32.totalorder %s3469_s10, %s4325_s3 }
  0x28   :  { %p3475_p4 = pnand %p3473_p3, %p3470_p2 }
  0x2a   :  { %3478 = shalt.err (!%p3475_p4)
}
  0x2b   :  { %s3479_s1 = scalar_lea.vmem %s47_s28, 256  ;;  %p3484_p6 = scmp.lt.s32.totalorder %s47_s28, %s47_s28 }
  0x2c   :  { %p3480_p5 = scmp.ne.s32.totalorder %s47_s28, %s3479_s1  ;;  %p3485_p7 = scmp.lt.s32.totalorder %s3479_s1, %s3479_s1 }
  0x2e   :  { %p3486_p8 = por %p3485_p7, %p3484_p6 }
  0x30   :  { %p3487_p9 = pnand %p3486_p8, %p3480_p5 }
  0x32   :  { %3490 = shalt.err (!%p3487_p9)
}
  0x33   :  { %52 = dma.hbm_to_vmem [thread:$0]  %s4325_s3, 256, %s47_s28, [#allocation5], %s3521_s13, %s3521_s13, %s3522_s14  }
  0x34   :  { %s3491_s20 = scalar_lea.hbm %s4328_s6, 256 }
  0x35   :  { %p3492_p10 = scmp.ne.s32.totalorder %s4328_s6, %s3491_s20  ;;  %p3495_p11 = scmp.lt.u32.totalorder %s3491_s20, %s4328_s6 }
  0x37   :  { %p3497_p12 = pnand %p3495_p11, %p3492_p10 }
  0x39   :  { %3500 = shalt.err (!%p3497_p12)
}
  0x3a   :  { %s3501_s2 = scalar_lea.vmem %s3616_s30, 256  ;;  %p3506_p0 = scmp.lt.s32.totalorder %s3616_s30, %s3616_s30 }
  0x3b   :  { %p3502_p13 = scmp.ne.s32.totalorder %s3616_s30, %s3501_s2  ;;  %p3507_p1 = scmp.lt.s32.totalorder %s3501_s2, %s3501_s2 }
  0x3d   :  { %p3508_p2 = por %p3507_p1, %p3506_p0 }
  0x3f   :  { %p3509_p3 = pnand %p3508_p2, %p3502_p13 }
  0x41   :  { %3512 = shalt.err (!%p3509_p3)
}
  0x42   :  { %68 = dma.hbm_to_vmem [thread:$0]  %s4328_s6, 256, %s3616_s30, [#allocation8], %s3521_s13, %s3521_s13, %s3522_s14  }
  0x43   :  { %3513 = dma.done.wait [#allocation3], 256  }
  0x44   :  { %3514 = vsyncadd [#allocation3], 4294967040 }
  0x45   :  { %3515 = dma.done.wait [#allocation5], 512  }
  0x46   :  { %3516 = vsyncadd [#allocation5], 4294966784 }
  0x47   :  { %3517 = dma.done.wait [#allocation8], 256  }
  0x48   :  { %3518 = vsyncadd [#allocation8], 4294967040  ;;  %v3525_v0 = vmov 0.0   ;;  %vm3526_vm0 = vmmov 0   ;;  %v3330_v1 = vld [vmem:[%s4326_s4] ss:$12 sps:$4 sm:$0xff]   ;;  %v109_v6 = vlaneseq }
  0x49   :  { %3026 = vmatprep.subr.bf16.mxu1 %v3525_v0  ;;  %3030 = vmatprep.mubr.msk.bf16.mxu1 %vm3526_vm0, %v3525_v0  ;;  %v3331_v2 = vld [vmem:[%s4326_s4 + $0x18] ss:$12 sps:$4 sm:$0xff]   ;;  %v3673_v4 = vld [vmem:[%s4322_s0 + $0x8] sm:$0xff]  ;;  %vm125_vm1 = vcmask 261120   ;;  %v3685_v9 = vld [vmem:[#allocation7] sm:$0xff]  ;;  %vm175_vm2 = vcmask 64512  }
  0x4a   :  { %3040 = vmatprep.subr.bf16.mxu0 %v3525_v0  ;;  %3042 = vmatprep.mubr.msk.bf16.mxu0 %vm3526_vm0, %v3525_v0  ;;  %v3668_v3 = vld [vmem:[%s4322_s0] sm:$0xff]  ;;  %v3682_v7 = vshrl.u32 %v109_v6, 7  ;;  %s3527_s0 = smov 96   ;;  %v86_v23 = vld [vmem:[#allocation4] sm:$0xff]  ;;  %v87_v25 = vld [vmem:[#allocation4 + $0x8] sm:$0xff]  ;;  %s3528_s9 = smov 64  }
  0x4b   :  { %3027 = vmatpush3.bf16.msra.mxu1 %v3330_v1  ;;  %v108_v5 = vpack.c.bf16 %v3673_v4, %v3668_v3  ;;  %v88_v24 = vcvt.s32.f32 %v86_v23  ;;  %v89_v27 = vcvt.s32.f32 %v87_v25  ;;  %vm300_vm3 = vcmask 1043456   ;;  %v3332_v53 = vld [vmem:[%s4326_s4 + $0x8] ss:$0 sps:$4 sm:$0xff]   ;;  %s3529_s12 = smov 88   ;;  %s3530_s15 = smov 120  }
  0x4c   :  { %3028 = vmatprep.subr.bf16.mxu1 %v3525_v0  ;;  %v111_v8 = vsub.s32 0, %v3682_v7  ;;  %s3531_s16 = smov 56   ;;  %s3532_s1 = smov 80   ;;  %vm2683_vm4 = vcmask 523264   ;;  %vm2834_vm5 = vcmask 326656   ;;  %vm2837_vm6 = vcmask 392192  }
  0x4d   :  { %v3710_v26 = vmul.f32 -1e+09, %v88_v24  ;;  %v3713_v31 = vmul.f32 -1e+09, %v89_v27  ;;  %s3533_s27 = smov 112   ;;  %s3534_s19 = smov 48  }
  0x4e   :  { %v112_v10 = vrot.slane %v3685_v9, %v111_v8  ;;  %s3535_s22 = smov 72   ;;  %s3536_s23 = smov 104   ;;  %vm2840_vm7 = vcmask 457728   ;;  %vm2845_vm8 = vcmask 588800   ;;  %vm2848_vm9 = vcmask 654336  }
  0x4f   :  { %3029 = vmatpush3.bf16.msra.mxu1 %v3331_v2  ;;  %s3537_s24 = smov 40   ;;  %s3538_s29 = smov 32   ;;  %vm2851_vm10 = vcmask 719872   ;;  %vm2854_vm11 = vcmask 785408  }
  0x50   :  { %3034 = vmatprep.subr.bf16.mxu1 %v3525_v0 }
  0x52   :  { %3031 = vmatmul.mubr.msk.bf16.vlgmr.msra.gmra.mrb[0].mxu1 %vm125_vm1, %v108_v5 }
  0x53   :  { %3036 = vmatprep.mubr.msk.bf16.mxu1 %vm3526_vm0, %v3525_v0 }
 0x125   :  { %v163_v11 = vpop.f32.mrb[0].mxu1 }
 0x126   :  { %v164_v12 = vadd.f32 %v163_v11, %v112_v10  ;;  %v3032_v13 = vpop.f32.mrb[1].mxu1 }
 0x127   :  { %v166_v14 = vpop.f32.mrb[2].mxu1 }
 0x128   :  { %v3690_v15 = vpack.c.bf16 %v164_v12, %v164_v12  ;;  %v167_v16 = vadd.f32 %v166_v14, %v112_v10  ;;  %v3033_v17 = vpop.f32.mrb[3].mxu1 }
 0x12a   :  { %173 = vrot.lane.b32.xlu0 %v3690_v15, %s3527_s0  ;;  %v3694_v18 = vpack.c.bf16 %v167_v16, %v167_v16 }
 0x12e   :  { %223 = vrot.lane.b32.xlu0 %v3694_v18, %s3527_s0 }
 0x19c   :  { %v174_v19 = vpop.permute.xlu0 %173 }
 0x19d   :  { %v180_v20 = vsel %vm175_vm2, %v174_v19, 0 }
 0x19e   :  { %3035 = vmatpush3.bf16.xpose.msra.mxu1 %v180_v20 }
 0x19f   :  { %3046 = vmatprep.subr.bf16.mxu1 %v3525_v0 }
 0x1a0   :  { %v224_v21 = vpop.permute.xlu0 %223 }
 0x1a1   :  { %v229_v22 = vsel %vm175_vm2, %v224_v21, 0 }
 0x1a2   :  { %3041 = vmatpush3.bf16.xpose.msra.mxu0 %v229_v22 }
 0x1a3   :  { %3052 = vmatprep.subr.bf16.mxu0 %v3525_v0 }
 0x1a5   :  { %3037 = vmatmul.mubr.msk.bf16.vlgmr.msra.gmra.mrb[4].mxu1 %vm175_vm2, %v3690_v15 }
 0x1a6   :  { %3048 = vmatprep.mubr.msk.bf16.mxu1 %vm3526_vm0, %v3525_v0 }
 0x1a9   :  { %3043 = vmatmul.mubr.msk.bf16.vlgmr.msra.gmra.mrb[0].mxu0 %vm175_vm2, %v3694_v18 }
 0x1aa   :  { %3054 = vmatprep.mubr.msk.bf16.mxu0 %vm3526_vm0, %v3525_v0 }
 0x278   :  { %v216_v28 = vpop.f32.mrb[4].mxu1 }
 0x279   :  { %v217_v29 = vadd.f32 %v216_v28, %v3710_v26  ;;  %v3038_v30 = vpop.f32.mrb[5].mxu1 }
 0x27a   :  { %v219_v32 = vpop.f32.mrb[6].mxu1 }
 0x27b   :  { %v3039_v33 = vpop.f32.mrb[7].mxu1  ;;  %v271_v34 = vsel %vm175_vm2, %v217_v29, -inf }
 0x27c   :  { %v265_v35 = vpop.f32.mrb[0].mxu0  ;;  %272 = vmax.xlane.f32.xlu1 %v271_v34 }
 0x27d   :  { %v266_v36 = vadd.f32 %v265_v35, %v3713_v31  ;;  %v3044_v37 = vpop.f32.mrb[1].mxu0 }
 0x27e   :  { %v268_v38 = vpop.f32.mrb[2].mxu0 }
 0x27f   :  { %v3045_v39 = vpop.f32.mrb[3].mxu0  ;;  %v274_v40 = vsel %vm175_vm2, %v266_v36, -inf }
 0x280   :  { %275 = vmax.xlane.f32.xlu1 %v274_v40 }
 0x291   :  { %295 = vrot.lane.b32.xlu1 %v3690_v15, %s3528_s9 }
 0x309   :  { %v273_v41 = vpop.xlane.xlu1 %272 }
 0x30a   :  { %v277_v42 = vsub.f32 %v217_v29, %v273_v41 }
 0x30c   :  { %v279_v43 = vmul.f32 1.442695, %v277_v42 }
 0x30d   :  { %v276_v44 = vpop.xlane.xlu1 %275 }
 0x30e   :  { %3348 = vpow2.f32 %v279_v43  ;;  %v278_v45 = vsub.f32 %v266_v36, %v276_v44 }
 0x310   :  { %v281_v46 = vmul.f32 1.442695, %v278_v45 }
 0x311   :  { %v296_v47 = vpop.permute.xlu1 %295 }
 0x312   :  { %3350 = vpow2.f32 %v281_v46  ;;  %v302_v48 = vsel %vm300_vm3, %v296_v47, 0 }
 0x313   :  { %3047 = vmatpush3.bf16.msra.mxu1 %v302_v48 }
 0x314   :  { %3058 = vmatprep.subr.bf16.mxu1 %v3525_v0 }
 0x318   :  { %v3349_v49 = vpop.eup %3348 }
 0x319   :  { %v283_v50 = vsel %vm175_vm2, %v3349_v49, 0.0 }
 0x31a   :  { %284 = vadd.xlane.f32.xlu0 %v283_v50 }
 0x31c   :  { %v3351_v51 = vpop.eup %3350 }
 0x31d   :  { %v286_v52 = vsel %vm175_vm2, %v3351_v51, 0.0 }
 0x31e   :  { %287 = vadd.xlane.f32.xlu1 %v286_v52 }
 0x32f   :  { %344 = vrot.lane.b32.xlu1 %v3694_v18, %s3528_s9 }
 0x330   :  { %503 = vrot.lane.b32.xlu0 %v3694_v18, %s3529_s12 }
 0x333   :  { %396 = vrot.lane.b32.xlu1 %v3332_v53, %s3528_s9 }
 0x337   :  { %453 = vrot.lane.b32.xlu1 %v3690_v15, %s3529_s12 }
 0x33b   :  { %451 = vrot.lane.b32.xlu1 %v3690_v15, %s3530_s15 }
 0x33f   :  { %501 = vrot.lane.b32.xlu1 %v3694_v18, %s3530_s15 }
 0x3a7   :  { %v285_v54 = vpop.xlane.xlu0 %284 }
 0x3a8   :  { %3352 = vrcp.f32 %v285_v54 }
 0x3ab   :  { %v288_v55 = vpop.xlane.xlu1 %287  ;;  %v504_v16 = vpop.permute.xlu0 %503 }
 0x3ac   :  { %3354 = vrcp.f32 %v288_v55  ;;  %v509_v22 = vsel %vm175_vm2, %v504_v16, 0 }
 0x3af   :  { %v345_v56 = vpop.permute.xlu1 %344 }
 0x3b0   :  { %v350_v57 = vsel %vm300_vm3, %v345_v56, 0 }
 0x3b1   :  { %3053 = vmatpush3.bf16.msra.mxu0 %v350_v57 }
 0x3b2   :  { %v3353_v58 = vpop.eup %3352  ;;  %3064 = vmatprep.subr.bf16.mxu0 %v3525_v0 }
 0x3b3   :  { %v3740_v59 = vmul.f32 %v3353_v58, %v3349_v49  ;;  %v397_v60 = vpop.permute.xlu1 %396 }
 0x3b4   :  { %v402_v61 = vsel %vm300_vm3, %v397_v60, 0  ;;  %v3333_v60 = vld [vmem:[%s4326_s4 + $0x14] ss:$0 sps:$4 sm:$0xff]  }
 0x3b5   :  { %v293_v62 = vpack.c.bf16 %v3740_v59, %v3740_v59 }
 0x3b6   :  { %v3355_v63 = vpop.eup %3354 }
 0x3b7   :  { %v3745_v1 = vmul.f32 %v3355_v63, %v3351_v51  ;;  %3049 = vmatmul.mubr.msk.bf16.vlgmr.msra.gmra.mrb[8].mxu1 %vm175_vm2, %v293_v62  ;;  %v454_v2 = vpop.permute.xlu1 %453 }
 0x3b8   :  { %3059 = vmatpush3.bf16.msra.mxu1 %v402_v61  ;;  %3060 = vmatprep.mubr.msk.bf16.mxu1 %vm3526_vm0, %v3525_v0  ;;  %v459_v6 = vsel %vm175_vm2, %v454_v2, 0 }
 0x3b9   :  { %v294_v5 = vpack.c.bf16 %v3745_v1, %v3745_v1  ;;  %3070 = vmatprep.subr.bf16.mxu1 %v3525_v0 }
 0x3bb   :  { %3055 = vmatmul.mubr.msk.bf16.vlgmr.msra.gmra.mrb[4].mxu0 %vm175_vm2, %v294_v5  ;;  %v452_v10 = vpop.permute.xlu1 %451 }
 0x3bc   :  { %3065 = vmatpush3.bf16.xpose.msra.mxu0 %v459_v6  ;;  %3066 = vmatprep.mubr.msk.bf16.mxu0 %vm3526_vm0, %v3525_v0 }
 0x3bd   :  { %3076 = vmatprep.subr.bf16.mxu0 %v3525_v0 }
 0x3bf   :  { %v502_v28 = vpop.permute.xlu1 %501 }
 0x3c3   :  { %3067 = vmatmul.mubr.msk.bf16.vlgmr.msra.gmra.mrb[8].mxu0 %vm175_vm2, %v452_v10 }
 0x3c4   :  { %3078 = vmatprep.mubr.msk.bf16.mxu0 %vm3526_vm0, %v3525_v0 }
 0x48a   :  { %v338_v11 = vpop.f32.mrb[8].mxu1 }
 0x48b   :  { %v3050_v12 = vpop.f32.mrb[9].mxu1 }
 0x48c   :  { %v341_v13 = vpop.f32.mrb[10].mxu1 }
 0x48d   :  { %v3051_v14 = vpop.f32.mrb[11].mxu1 }
 0x48e   :  { %v386_v17 = vpop.f32.mrb[4].mxu0 }
 0x48f   :  { %v392_v19 = vpack.c.bf16 %v386_v17, %v338_v11  ;;  %v3056_v20 = vpop.f32.mrb[5].mxu0 }
 0x490   :  { %v389_v21 = vpop.f32.mrb[6].mxu0 }
 0x491   :  { %v3057_v23 = vpop.f32.mrb[7].mxu0  ;;  %3061 = vmatmul.mubr.msk.bf16.vlgmr.msra.gmra.mrb[12].mxu1 %vm175_vm2, %v392_v19 }
 0x492   :  { %3071 = vmatpush3.bf16.xpose.msra.mxu1 %v509_v22  ;;  %3072 = vmatprep.mubr.msk.bf16.mxu1 %vm3526_vm0, %v3525_v0 }
 0x493   :  { %3082 = vmatprep.subr.bf16.mxu1 %v3525_v0 }
 0x496   :  { %v495_v24 = vpop.f32.mrb[8].mxu0 }
 0x497   :  { %v496_v25 = vadd.f32 %v495_v24, %v3710_v26  ;;  %v3068_v27 = vpop.f32.mrb[9].mxu0 }
 0x498   :  { %v498_v29 = vpop.f32.mrb[10].mxu0 }
 0x499   :  { %v3069_v30 = vpop.f32.mrb[11].mxu0  ;;  %3073 = vmatmul.mubr.msk.bf16.vlgmr.msra.gmra.mrb[16].mxu1 %vm175_vm2, %v502_v28  ;;  %v551_v32 = vsel %vm175_vm2, %v496_v25, -inf }
 0x49a   :  { %552 = vmax.xlane.f32.xlu1 %v551_v32  ;;  %3084 = vmatprep.mubr.msk.bf16.mxu1 %vm3526_vm0, %v3525_v0 }
 0x527   :  { %v553_v33 = vpop.xlane.xlu1 %552 }
 0x528   :  { %v557_v34 = vsub.f32 %v496_v25, %v553_v33 }
 0x52a   :  { %v559_v35 = vmul.f32 1.442695, %v557_v34 }
 0x52c   :  { %3356 = vpow2.f32 %v559_v35 }
 0x536   :  { %v3357_v36 = vpop.eup %3356 }
 0x537   :  { %v563_v37 = vsel %vm175_vm2, %v3357_v36, 0.0 }
 0x538   :  { %564 = vadd.xlane.f32.xlu1 %v563_v37 }
 0x564   :  { %v3772_v38 = vpop.f32.mrb[12].mxu1 }
 0x565   :  { %v3062_v39 = vpop.f32.mrb[13].mxu1 }
 0x566   :  { %v3774_v40 = vpop.f32.mrb[14].mxu1 }
 0x567   :  { %v3063_v41 = vpop.f32.mrb[15].mxu1 }
 0x56c   :  { %v545_v42 = vpop.f32.mrb[16].mxu1 }
 0x56d   :  { %v546_v43 = vadd.f32 %v545_v42, %v3713_v31  ;;  %v3074_v44 = vpop.f32.mrb[17].mxu1 }
 0x56e   :  { %v548_v45 = vpop.f32.mrb[18].mxu1  ;;  %v447_v44 = vsub.s32 1, %v3682_v7 }
 0x56f   :  { %v3075_v46 = vpop.f32.mrb[19].mxu1  ;;  %v554_v47 = vsel %vm175_vm2, %v546_v43, -inf }
 0x570   :  { %555 = vmax.xlane.f32.xlu0 %v554_v47  ;;  %v448_v45 = vrot.slane %v3685_v9, %v447_v44 }
 0x572   :  { %v449_v46 = vadd.f32 %v448_v45, %v3772_v38  ;;  %v3334_v38 = vld [vmem:[%s4326_s4 + $0x20] ss:$0 sps:$4 sm:$0xff]  }
 0x586   :  { %575 = vrot.lane.b32.xlu0 %v3690_v15, %s3531_s16 }
 0x58a   :  { %728 = vrot.lane.b32.xlu0 %v3690_v15, %s3532_s1 }
 0x58e   :  { %726 = vrot.lane.b32.xlu0 %v3690_v15, %s3533_s27 }
 0x5c5   :  { %v565_v48 = vpop.xlane.xlu1 %564 }
 0x5c6   :  { %3358 = vrcp.f32 %v565_v48  ;;  %v450_v48 = vadd.f32 %v448_v45, %v3774_v40 }
 0x5d0   :  { %v3359_v49 = vpop.eup %3358 }
 0x5d1   :  { %v3784_v52 = vmul.f32 %v3359_v49, %v3357_v36 }
 0x5d3   :  { %v573_v56 = vpack.c.bf16 %v3784_v52, %v3784_v52 }
 0x5fd   :  { %v556_v50 = vpop.xlane.xlu0 %555 }
 0x5fe   :  { %v558_v51 = vsub.f32 %v546_v43, %v556_v50 }
 0x600   :  { %v561_v53 = vmul.f32 1.442695, %v558_v51 }
 0x601   :  { %v576_v54 = vpop.permute.xlu0 %575 }
 0x602   :  { %3360 = vpow2.f32 %v561_v53  ;;  %v581_v55 = vsel %vm300_vm3, %v576_v54, 0 }
 0x603   :  { %3077 = vmatpush3.bf16.msra.mxu0 %v581_v55 }
 0x604   :  { %3088 = vmatprep.subr.bf16.mxu0 %v3525_v0 }
 0x605   :  { %v729_v11 = vpop.permute.xlu0 %728 }
 0x606   :  { %3079 = vmatmul.mubr.msk.bf16.vlgmr.msra.gmra.mrb[12].mxu0 %vm175_vm2, %v573_v56  ;;  %v734_v13 = vsel %vm175_vm2, %v729_v11, 0 }
 0x607   :  { %3090 = vmatprep.mubr.msk.bf16.mxu0 %vm3526_vm0, %v3525_v0 }
 0x609   :  { %v727_v14 = vpop.permute.xlu0 %726 }
 0x60c   :  { %v3361_v57 = vpop.eup %3360 }
 0x60d   :  { %v566_v58 = vsel %vm175_vm2, %v3361_v57, 0.0 }
 0x60e   :  { %567 = vadd.xlane.f32.xlu1 %v566_v58 }
 0x61f   :  { %623 = vrot.lane.b32.xlu1 %v3694_v18, %s3531_s16 }
 0x623   :  { %675 = vrot.lane.b32.xlu1 %v3333_v60, %s3528_s9 }
 0x627   :  { %778 = vrot.lane.b32.xlu1 %v3694_v18, %s3532_s1 }
 0x62b   :  { %776 = vrot.lane.b32.xlu1 %v3694_v18, %s3533_s27 }
 0x69b   :  { %v568_v61 = vpop.xlane.xlu1 %567 }
 0x69c   :  { %3362 = vrcp.f32 %v568_v61 }
 0x69f   :  { %v624_v62 = vpop.permute.xlu1 %623 }
 0x6a0   :  { %v629_v63 = vsel %vm300_vm3, %v624_v62, 0 }
 0x6a1   :  { %3083 = vmatpush3.bf16.msra.mxu1 %v629_v63 }
 0x6a2   :  { %3094 = vmatprep.subr.bf16.mxu1 %v3525_v0 }
 0x6a3   :  { %v676_v2 = vpop.permute.xlu1 %675 }
 0x6a4   :  { %v681_v5 = vsel %vm300_vm3, %v676_v2, 0 }
 0x6a5   :  { %3089 = vmatpush3.bf16.msra.mxu0 %v681_v5 }
 0x6a6   :  { %v3363_v6 = vpop.eup %3362  ;;  %3100 = vmatprep.subr.bf16.mxu0 %v3525_v0 }
 0x6a7   :  { %v3808_v10 = vmul.f32 %v3363_v6, %v3361_v57  ;;  %v779_v21 = vpop.permute.xlu1 %778 }
 0x6a8   :  { %v784_v27 = vsel %vm175_vm2, %v779_v21, 0 }
 0x6a9   :  { %v574_v12 = vpack.c.bf16 %v3808_v10, %v3808_v10 }
 0x6ab   :  { %3085 = vmatmul.mubr.msk.bf16.vlgmr.msra.gmra.mrb[20].mxu1 %vm175_vm2, %v574_v12  ;;  %v777_v33 = vpop.permute.xlu1 %776 }
 0x6ac   :  { %3095 = vmatpush3.bf16.xpose.msra.mxu1 %v734_v13  ;;  %3096 = vmatprep.mubr.msk.bf16.mxu1 %vm3526_vm0, %v3525_v0 }
 0x6ad   :  { %3106 = vmatprep.subr.bf16.mxu1 %v3525_v0 }
 0x6b3   :  { %3097 = vmatmul.mubr.msk.bf16.vlgmr.msra.gmra.mrb[24].mxu1 %vm175_vm2, %v727_v14 }
 0x6b4   :  { %3108 = vmatprep.mubr.msk.bf16.mxu1 %vm3526_vm0, %v3525_v0 }
 0x6d9   :  { %v617_v16 = vpop.f32.mrb[12].mxu0 }
 0x6da   :  { %v3080_v17 = vpop.f32.mrb[13].mxu0 }
 0x6db   :  { %v620_v19 = vpop.f32.mrb[14].mxu0 }
 0x6dc   :  { %v3081_v20 = vpop.f32.mrb[15].mxu0 }
 0x77e   :  { %v665_v22 = vpop.f32.mrb[20].mxu1 }
 0x77f   :  { %v671_v23 = vpack.c.bf16 %v665_v22, %v617_v16  ;;  %v3086_v24 = vpop.f32.mrb[21].mxu1 }
 0x780   :  { %v668_v25 = vpop.f32.mrb[22].mxu1 }
 0x781   :  { %v3087_v28 = vpop.f32.mrb[23].mxu1  ;;  %3091 = vmatmul.mubr.msk.bf16.vlgmr.msra.gmra.mrb[16].mxu0 %vm175_vm2, %v671_v23 }
 0x782   :  { %3101 = vmatpush3.bf16.xpose.msra.mxu0 %v784_v27  ;;  %3102 = vmatprep.mubr.msk.bf16.mxu0 %vm3526_vm0, %v3525_v0 }
 0x783   :  { %3112 = vmatprep.subr.bf16.mxu0 %v3525_v0 }
 0x786   :  { %v770_v29 = vpop.f32.mrb[24].mxu1 }
 0x787   :  { %v771_v30 = vadd.f32 %v770_v29, %v3710_v26  ;;  %v3098_v32 = vpop.f32.mrb[25].mxu1 }
 0x788   :  { %v773_v34 = vpop.f32.mrb[26].mxu1 }
 0x789   :  { %v3099_v35 = vpop.f32.mrb[27].mxu1  ;;  %3103 = vmatmul.mubr.msk.bf16.vlgmr.msra.gmra.mrb[20].mxu0 %vm175_vm2, %v777_v33  ;;  %v826_v36 = vsel %vm175_vm2, %v771_v30, -inf }
 0x78a   :  { %827 = vmax.xlane.f32.xlu0 %v826_v36  ;;  %3114 = vmatprep.mubr.msk.bf16.mxu0 %vm3526_vm0, %v3525_v0 }
 0x817   :  { %v828_v37 = vpop.xlane.xlu0 %827 }
 0x818   :  { %v832_v39 = vsub.f32 %v771_v30, %v828_v37 }
 0x81a   :  { %v834_v41 = vmul.f32 1.442695, %v832_v39 }
 0x81c   :  { %3364 = vpow2.f32 %v834_v41 }
 0x826   :  { %v3365_v42 = vpop.eup %3364 }
 0x827   :  { %v838_v43 = vsel %vm175_vm2, %v3365_v42, 0.0 }
 0x828   :  { %839 = vadd.xlane.f32.xlu0 %v838_v43 }
 0x854   :  { %v717_v47 = vpop.f32.mrb[16].mxu0 }
 0x855   :  { %v3837_v49 = vadd.f32 %v717_v47, %v449_v46  ;;  %v3092_v50 = vpop.f32.mrb[17].mxu0 }
 0x856   :  { %v720_v51 = vpop.f32.mrb[18].mxu0 }
 0x857   :  { %v3839_v53 = vadd.f32 %v720_v51, %v450_v48  ;;  %v3093_v54 = vpop.f32.mrb[19].mxu0 }
 0x85c   :  { %v820_v55 = vpop.f32.mrb[20].mxu0 }
 0x85d   :  { %v821_v56 = vadd.f32 %v820_v55, %v3713_v31  ;;  %v3104_v57 = vpop.f32.mrb[21].mxu0 }
 0x85e   :  { %v823_v58 = vpop.f32.mrb[22].mxu0 }
 0x85f   :  { %v3105_v60 = vpop.f32.mrb[23].mxu0  ;;  %v829_v61 = vsel %vm175_vm2, %v821_v56, -inf }
 0x860   :  { %830 = vmax.xlane.f32.xlu1 %v829_v61 }
 0x871   :  { %850 = vrot.lane.b32.xlu1 %v3690_v15, %s3534_s19 }
 0x875   :  { %950 = vrot.lane.b32.xlu1 %v3334_v38, %s3528_s9 }
 0x879   :  { %1003 = vrot.lane.b32.xlu1 %v3690_v15, %s3535_s22 }
 0x87d   :  { %1001 = vrot.lane.b32.xlu1 %v3690_v15, %s3536_s23 }
 0x8b5   :  { %v840_v40 = vpop.xlane.xlu0 %839 }
 0x8b6   :  { %3366 = vrcp.f32 %v840_v40 }
 0x8c0   :  { %v3367_v62 = vpop.eup %3366 }
 0x8c1   :  { %v3853_v5 = vmul.f32 %v3367_v62, %v3365_v42 }
 0x8c3   :  { %v848_v13 = vpack.c.bf16 %v3853_v5, %v3853_v5 }
 0x8ed   :  { %v831_v63 = vpop.xlane.xlu1 %830 }
 0x8ee   :  { %v833_v2 = vsub.f32 %v821_v56, %v831_v63 }
 0x8f0   :  { %v836_v6 = vmul.f32 1.442695, %v833_v2 }
 0x8f1   :  { %v851_v11 = vpop.permute.xlu1 %850 }
 0x8f2   :  { %3368 = vpow2.f32 %v836_v6  ;;  %v856_v12 = vsel %vm300_vm3, %v851_v11, 0 }
 0x8f3   :  { %3107 = vmatpush3.bf16.msra.mxu1 %v856_v12 }
 0x8f4   :  { %3118 = vmatprep.subr.bf16.mxu1 %v3525_v0 }
 0x8f5   :  { %v951_v14 = vpop.permute.xlu1 %950 }
 0x8f6   :  { %v956_v16 = vsel %vm300_vm3, %v951_v14, 0  ;;  %3109 = vmatmul.mubr.msk.bf16.vlgmr.msra.gmra.mrb[28].mxu1 %vm175_vm2, %v848_v13 }
 0x8f7   :  { %3119 = vmatpush3.bf16.msra.mxu1 %v956_v16  ;;  %3120 = vmatprep.mubr.msk.bf16.mxu1 %vm3526_vm0, %v3525_v0 }
 0x8f8   :  { %3130 = vmatprep.subr.bf16.mxu1 %v3525_v0 }
 0x8f9   :  { %v1004_v25 = vpop.permute.xlu1 %1003 }
 0x8fa   :  { %v1009_v28 = vsel %vm175_vm2, %v1004_v25, 0  ;;  %v3335_v25 = vld [vmem:[%s4326_s4 + $0x2c] ss:$0 sps:$4 sm:$0xff]  }
 0x8fc   :  { %v3369_v17 = vpop.eup %3368 }
 0x8fd   :  { %v841_v19 = vsel %vm175_vm2, %v3369_v17, 0.0  ;;  %v1002_v29 = vpop.permute.xlu1 %1001 }
 0x8fe   :  { %842 = vadd.xlane.f32.xlu0 %v841_v19 }
 0x914   :  { %898 = vrot.lane.b32.xlu0 %v3694_v18, %s3534_s19 }
 0x918   :  { %1053 = vrot.lane.b32.xlu0 %v3694_v18, %s3535_s22 }
 0x91c   :  { %1051 = vrot.lane.b32.xlu0 %v3694_v18, %s3536_s23 }
 0x98b   :  { %v843_v20 = vpop.xlane.xlu0 %842 }
 0x98c   :  { %3370 = vrcp.f32 %v843_v20 }
 0x98f   :  { %v899_v21 = vpop.permute.xlu0 %898 }
 0x990   :  { %v904_v22 = vsel %vm300_vm3, %v899_v21, 0 }
 0x991   :  { %3113 = vmatpush3.bf16.msra.mxu0 %v904_v22 }
 0x992   :  { %3124 = vmatprep.subr.bf16.mxu0 %v3525_v0 }
 0x993   :  { %v1054_v35 = vpop.permute.xlu0 %1053 }
 0x994   :  { %v1059_v42 = vsel %vm175_vm2, %v1054_v35, 0 }
 0x996   :  { %v3371_v23 = vpop.eup %3370 }
 0x997   :  { %v3873_v24 = vmul.f32 %v3371_v23, %v3369_v17  ;;  %v1052_v48 = vpop.permute.xlu0 %1051 }
 0x999   :  { %v849_v27 = vpack.c.bf16 %v3873_v24, %v3873_v24 }
 0x99b   :  { %3115 = vmatmul.mubr.msk.bf16.vlgmr.msra.gmra.mrb[24].mxu0 %vm175_vm2, %v849_v27 }
 0x99c   :  { %3125 = vmatpush3.bf16.xpose.msra.mxu0 %v1009_v28  ;;  %3126 = vmatprep.mubr.msk.bf16.mxu0 %vm3526_vm0, %v3525_v0 }
 0x99d   :  { %3136 = vmatprep.subr.bf16.mxu0 %v3525_v0 }
 0x9a3   :  { %3127 = vmatmul.mubr.msk.bf16.vlgmr.msra.gmra.mrb[28].mxu0 %vm175_vm2, %v1002_v29 }
 0x9a4   :  { %3138 = vmatprep.mubr.msk.bf16.mxu0 %vm3526_vm0, %v3525_v0 }
 0x9c9   :  { %v892_v30 = vpop.f32.mrb[28].mxu1 }
 0x9ca   :  { %v3110_v32 = vpop.f32.mrb[29].mxu1 }
 0x9cb   :  { %v895_v33 = vpop.f32.mrb[30].mxu1 }
 0x9cc   :  { %v3111_v34 = vpop.f32.mrb[31].mxu1 }
 0xa6e   :  { %v940_v36 = vpop.f32.mrb[24].mxu0 }
 0xa6f   :  { %v946_v37 = vpack.c.bf16 %v940_v36, %v892_v30  ;;  %v3116_v39 = vpop.f32.mrb[25].mxu0 }
 0xa70   :  { %v943_v41 = vpop.f32.mrb[26].mxu0 }
 0xa71   :  { %v3117_v43 = vpop.f32.mrb[27].mxu0  ;;  %3121 = vmatmul.mubr.msk.bf16.vlgmr.msra.gmra.mrb[32].mxu1 %vm175_vm2, %v946_v37 }
 0xa72   :  { %3131 = vmatpush3.bf16.xpose.msra.mxu1 %v1059_v42  ;;  %3132 = vmatprep.mubr.msk.bf16.mxu1 %vm3526_vm0, %v3525_v0 }
 0xa73   :  { %3142 = vmatprep.subr.bf16.mxu1 %v3525_v0 }
 0xa76   :  { %v1045_v45 = vpop.f32.mrb[28].mxu0 }
 0xa77   :  { %v1046_v46 = vadd.f32 %v1045_v45, %v3710_v26  ;;  %v3128_v47 = vpop.f32.mrb[29].mxu0 }
 0xa78   :  { %v1048_v50 = vpop.f32.mrb[30].mxu0 }
 0xa79   :  { %v3129_v51 = vpop.f32.mrb[31].mxu0  ;;  %3133 = vmatmul.mubr.msk.bf16.vlgmr.msra.gmra.mrb[36].mxu1 %vm175_vm2, %v1052_v48  ;;  %v1101_v54 = vsel %vm175_vm2, %v1046_v46, -inf }
 0xa7a   :  { %1102 = vmax.xlane.f32.xlu1 %v1101_v54  ;;  %3144 = vmatprep.mubr.msk.bf16.mxu1 %vm3526_vm0, %v3525_v0 }
 0xb07   :  { %v1103_v55 = vpop.xlane.xlu1 %1102 }
 0xb08   :  { %v1107_v56 = vsub.f32 %v1046_v46, %v1103_v55 }
 0xb0a   :  { %v1109_v57 = vmul.f32 1.442695, %v1107_v56 }
 0xb0c   :  { %3372 = vpow2.f32 %v1109_v57 }
 0xb16   :  { %v3373_v13 = vpop.eup %3372 }
 0xb44   :  { %v992_v58 = vpop.f32.mrb[32].mxu1 }
 0xb45   :  { %v3896_v60 = vadd.f32 %v992_v58, %v3837_v49  ;;  %v3122_v26 = vpop.f32.mrb[33].mxu1  ;;  %v1113_v49 = vsel %vm175_vm2, %v3373_v13, 0.0 }
 0xb46   :  { %v995_v61 = vpop.f32.mrb[34].mxu1 }
 0xb47   :  { %v3899_v38 = vadd.f32 %v995_v61, %v3839_v53  ;;  %v3123_v40 = vpop.f32.mrb[35].mxu1  ;;  %v3336_v61 = vld [vmem:[%s4326_s4 + $0x4] ss:$12 sps:$4 sm:$0xff]  }
 0xb48   :  { %v85_v40 = vld [vmem:[#allocation2 + $0x8] sm:$0xff] }
 0xb4c   :  { %v1095_v62 = vpop.f32.mrb[36].mxu1 }
 0xb4d   :  { %v1096_v63 = vadd.f32 %v1095_v62, %v3713_v31  ;;  %v3134_v2 = vpop.f32.mrb[37].mxu1 }
 0xb4e   :  { %v1098_v6 = vpop.f32.mrb[38].mxu1 }
 0xb4f   :  { %v3135_v11 = vpop.f32.mrb[39].mxu1  ;;  %v1104_v12 = vsel %vm175_vm2, %v1096_v63, -inf }
 0xb50   :  { %1105 = vmax.xlane.f32.xlu0 %v1104_v12 }
 0xb54   :  { %1114 = vadd.xlane.f32.xlu0 %v1113_v49 }
 0xb6a   :  { %1125 = vrot.lane.b32.xlu0 %v3690_v15, %s3537_s24 }
 0xbdd   :  { %v1106_v53 = vpop.xlane.xlu0 %1105 }
 0xbde   :  { %v1108_v14 = vsub.f32 %v1096_v63, %v1106_v53 }
 0xbe0   :  { %v1111_v16 = vmul.f32 1.442695, %v1108_v14  ;;  %v1328_v14 = vsub.s32 4, %v3682_v7 }
 0xbe1   :  { %v1115_v17 = vpop.xlane.xlu0 %1114 }
 0xbe2   :  { %3374 = vpow2.f32 %v1111_v16  ;;  %v1329_v16 = vrot.slane %v3685_v9, %v1328_v14 }
 0xbe3   :  { %3376 = vrcp.f32 %v1115_v17 }
 0xbe5   :  { %v1126_v31 = vpop.permute.xlu0 %1125 }
 0xbe6   :  { %v1131_v19 = vsel %vm300_vm3, %v1126_v31, 0 }
 0xbe7   :  { %3137 = vmatpush3.bf16.msra.mxu0 %v1131_v19 }
 0xbe8   :  { %3148 = vmatprep.subr.bf16.mxu0 %v3525_v0 }
 0xbec   :  { %v3375_v20 = vpop.eup %3374 }
 0xbed   :  { %v3377_v21 = vpop.eup %3376  ;;  %v1116_v22 = vsel %vm175_vm2, %v3375_v20, 0.0 }
 0xbee   :  { %v3909_v23 = vmul.f32 %v3377_v21, %v3373_v13  ;;  %1117 = vadd.xlane.f32.xlu1 %v1116_v22 }
 0xbf0   :  { %v1123_v15 = vpack.c.bf16 %v3909_v23, %v3909_v23 }
 0xbf2   :  { %3139 = vmatmul.mubr.msk.bf16.vlgmr.msra.gmra.mrb[32].mxu0 %vm175_vm2, %v1123_v15 }
 0xbf3   :  { %3150 = vmatprep.mubr.msk.bf16.mxu0 %vm3526_vm0, %v3525_v0 }
 0xbff   :  { %1173 = vrot.lane.b32.xlu1 %v3694_v18, %s3537_s24 }
 0xc03   :  { %1225 = vrot.lane.b32.xlu1 %v3335_v25, %s3528_s9 }
 0xc7b   :  { %v1118_v27 = vpop.xlane.xlu1 %1117 }
 0xc7c   :  { %3378 = vrcp.f32 %v1118_v27 }
 0xc7f   :  { %v1174_v28 = vpop.permute.xlu1 %1173 }
 0xc80   :  { %v1179_v29 = vsel %vm300_vm3, %v1174_v28, 0 }
 0xc81   :  { %3143 = vmatpush3.bf16.msra.mxu1 %v1179_v29 }
 0xc82   :  { %3154 = vmatprep.subr.bf16.mxu1 %v3525_v0 }
 0xc83   :  { %v1226_v33 = vpop.permute.xlu1 %1225 }
 0xc84   :  { %v1231_v34 = vsel %vm300_vm3, %v1226_v33, 0 }
 0xc85   :  { %3149 = vmatpush3.bf16.msra.mxu0 %v1231_v34  ;;  %v1307_v34 = vsub.s32 2, %v3682_v7 }
 0xc86   :  { %v3379_v30 = vpop.eup %3378  ;;  %3162 = vmatprep.subr.bf16.mxu0 %v3525_v0 }
 0xc87   :  { %v3924_v32 = vmul.f32 %v3379_v30, %v3375_v20 }
 0xc89   :  { %v1124_v18 = vpack.c.bf16 %v3924_v32, %v3924_v32 }
 0xc8b   :  { %3145 = vmatmul.mubr.msk.bf16.vlgmr.msra.gmra.mrb[40].mxu1 %vm175_vm2, %v1124_v18 }
 0xc8c   :  { %3158 = vmatprep.mubr.msk.bf16.mxu1 %vm3526_vm0, %v3525_v0  ;;  %3155 = vmatpush3.bf16.msra.mxu1 %v3336_v61 }
 0xc8d   :  { %3156 = vmatprep.subr.bf16.mxu1 %v3525_v0 }
 0xcc5   :  { %v1167_v35 = vpop.f32.mrb[32].mxu0 }
 0xcc6   :  { %v3140_v36 = vpop.f32.mrb[33].mxu0 }
 0xcc7   :  { %v1170_v37 = vpop.f32.mrb[34].mxu0  ;;  %v1308_v36 = vrot.slane %v3685_v9, %v1307_v34 }
 0xcc8   :  { %v3141_v39 = vpop.f32.mrb[35].mxu0 }
 0xcc9   :  { %v1313_v39 = vsub.s32 3, %v3682_v7 }
 0xd5e   :  { %v1215_v41 = vpop.f32.mrb[40].mxu1 }
 0xd5f   :  { %v1221_v42 = vpack.c.bf16 %v1215_v41, %v1167_v35  ;;  %v3146_v43 = vpop.f32.mrb[41].mxu1 }
 0xd60   :  { %v1218_v45 = vpop.f32.mrb[42].mxu1 }
 0xd61   :  { %v3147_v46 = vpop.f32.mrb[43].mxu1  ;;  %3151 = vmatmul.mubr.msk.bf16.vlgmr.msra.gmra.mrb[36].mxu0 %vm175_vm2, %v1221_v42  ;;  %v1314_v45 = vrot.slane %v3685_v9, %v1313_v39 }
 0xd62   :  { %3166 = vmatprep.mubr.msk.bf16.mxu0 %vm3526_vm0, %v3525_v0  ;;  %3163 = vmatpush3.bf16.msra.mxu0 %v3336_v61 }
 0xd63   :  { %3164 = vmatprep.subr.bf16.mxu0 %v3525_v0 }
 0xe34   :  { %v1267_v47 = vpop.f32.mrb[36].mxu0 }
 0xe35   :  { %v1274_v48 = vadd.f32 %v1267_v47, %v3896_v60  ;;  %v3152_v50 = vpop.f32.mrb[37].mxu0  ;;  %v3337_v60 = vld [vmem:[%s4326_s4 + $0x1c] ss:$12 sps:$4 sm:$0xff]  }
 0xe36   :  { %v1270_v51 = vpop.f32.mrb[38].mxu0  ;;  %3165 = vmatpush3.bf16.msra.mxu0 %v3337_v60  ;;  %3157 = vmatpush3.bf16.msra.mxu1 %v3337_v60 }
 0xe37   :  { %v1275_v54 = vadd.f32 %v1270_v51, %v3899_v38  ;;  %v3153_v55 = vpop.f32.mrb[39].mxu0  ;;  %v1276_v56 = vadd.f32 %v1274_v48, %v3668_v3  ;;  %v84_v38 = vld [vmem:[#allocation2] sm:$0xff]  ;;  %3170 = vmatprep.subr.bf16.mxu1 %v3525_v0  ;;  %3176 = vmatprep.subr.bf16.mxu0 %v3525_v0 }
 0xe38   :  { %v1386_v3 = vpack.c.bf16 %v85_v40, %v84_v38 }
 0xe39   :  { %v1278_v57 = vsel %vm125_vm1, %v1276_v56, 0.0  ;;  %v1277_v58 = vadd.f32 %v1275_v54, %v3673_v4 }
 0xe3a   :  { %1279 = vadd.xlane.f32.xlu0 %v1278_v57  ;;  %3167 = vmatmul.mubr.msk.bf16.vlgmr.msra.gmra.mrb[40].mxu0 %vm125_vm1, %v1386_v3  ;;  %v92_v3 = vld [vmem:[#allocation6] sm:$0xff] }
 0xe3b   :  { %v1281_v26 = vsel %vm125_vm1, %v1277_v58, 0.0  ;;  %3178 = vmatprep.mubr.msk.bf16.mxu0 %vm3526_vm0, %v3525_v0 }
 0xe3c   :  { %1282 = vadd.xlane.f32.xlu1 %v1281_v26 }
 0xec7   :  { %v1280_v4 = vpop.xlane.xlu0 %1279 }
 0xec8   :  { %v1285_v62 = vmul.f32 0.03125, %v1280_v4  ;;  %v93_v4 = vld [vmem:[#allocation6 + $0x8] sm:$0xff] }
 0xec9   :  { %v1283_v63 = vpop.xlane.xlu1 %1282 }
 0xeca   :  { %v1287_v2 = vsub.f32 %v1276_v56, %v1285_v62  ;;  %v1286_v6 = vmul.f32 0.03125, %v1283_v63  ;;  %v94_v62 = vcvt.s32.f32 %v92_v3  ;;  %v95_v63 = vcvt.s32.f32 %v93_v4 }
 0xecc   :  { %v1288_v11 = vsub.f32 %v1277_v58, %v1286_v6  ;;  %v1289_v12 = vmul.f32 %v1287_v2, %v1287_v2  ;;  %v4002_v6 = vmul.f32 -1e+09, %v95_v63 }
 0xece   :  { %v1291_v13 = vsel %vm125_vm1, %v1289_v12, 0.0  ;;  %v1290_v49 = vmul.f32 %v1288_v11, %v1288_v11 }
 0xecf   :  { %1292 = vadd.xlane.f32.xlu0 %v1291_v13 }
 0xed0   :  { %v1294_v53 = vsel %vm125_vm1, %v1290_v49, 0.0 }
 0xed3   :  { %1295 = vadd.xlane.f32.xlu0 %v1294_v53 }
 0xf0d   :  { %v1424_v17 = vpop.f32.mrb[40].mxu0 }
 0xf0e   :  { %v1425_v31 = vadd.f32 %v1424_v17, %v1329_v16  ;;  %v3168_v19 = vpop.f32.mrb[41].mxu0 }
 0xf0f   :  { %v1427_v20 = vpop.f32.mrb[42].mxu0 }
 0xf10   :  { %v3959_v21 = vpack.c.bf16 %v1425_v31, %v1425_v31  ;;  %v1428_v22 = vadd.f32 %v1427_v20, %v1329_v16  ;;  %v3169_v15 = vpop.f32.mrb[43].mxu0 }
 0xf12   :  { %v3961_v25 = vpack.c.bf16 %v1428_v22, %v1428_v22  ;;  %1436 = vrot.lane.b32.xlu1 %v3959_v21, %s3527_s0 }
 0xf14   :  { %1485 = vrot.lane.b32.xlu0 %v3961_v25, %s3527_s0 }
 0xf5c   :  { %v1293_v27 = vpop.xlane.xlu0 %1292 }
 0xf5d   :  { %v1297_v28 = vmul.f32 0.03125, %v1293_v27 }
 0xf5f   :  { %v1299_v29 = vadd.f32 1e-05, %v1297_v28 }
 0xf60   :  { %v1296_v30 = vpop.xlane.xlu0 %1295 }
 0xf61   :  { %3380 = vrsqrt.f32 %v1299_v29  ;;  %v1298_v18 = vmul.f32 0.03125, %v1296_v30 }
 0xf63   :  { %v1300_v33 = vadd.f32 1e-05, %v1298_v18 }
 0xf65   :  { %3382 = vrsqrt.f32 %v1300_v33 }
 0xf6b   :  { %v3381_v35 = vpop.eup %3380 }
 0xf6c   :  { %v1303_v37 = vmul.f32 %v3381_v35, %v1287_v2  ;;  %v4000_v2 = vmul.f32 -1e+09, %v94_v62 }
 0xf6e   :  { %v1309_v42 = vmul.f32 %v1308_v36, %v1303_v37 }
 0xf6f   :  { %v3383_v41 = vpop.eup %3382 }
 0xf70   :  { %v1304_v43 = vmul.f32 %v3383_v41, %v1288_v11  ;;  %v3975_v47 = vadd.f32 %v1314_v45, %v1309_v42  ;;  %v3338_v41 = vld [vmem:[%s4326_s4 + $0x8] ss:$0 sps:$4 sm:$0xff]  }
 0xf72   :  { %v1310_v46 = vmul.f32 %v1308_v36, %v1304_v43 }
 0xf74   :  { %v3977_v48 = vadd.f32 %v1314_v45, %v1310_v46 }
 0xf76   :  { %v1325_v50 = vpack.c.bf16 %v3977_v48, %v3975_v47 }
 0xf78   :  { %3159 = vmatmul.mubr.msk.bf16.vlgmr.msra.gmra.mrb[44].mxu1 %vm125_vm1, %v1325_v50 }
 0xf79   :  { %3172 = vmatprep.mubr.msk.bf16.mxu1 %vm3526_vm0, %v3525_v0 }
 0xf84   :  { %v1437_v51 = vpop.permute.xlu1 %1436 }
 0xf85   :  { %v1442_v54 = vsel %vm175_vm2, %v1437_v51, 0 }
 0xf86   :  { %v1486_v55 = vpop.permute.xlu0 %1485  ;;  %3171 = vmatpush3.bf16.xpose.msra.mxu1 %v1442_v54 }
 0xf87   :  { %v1491_v9 = vsel %vm175_vm2, %v1486_v55, 0  ;;  %3182 = vmatprep.subr.bf16.mxu1 %v3525_v0 }
 0xf88   :  { %3177 = vmatpush3.bf16.xpose.msra.mxu0 %v1491_v9 }
 0xf89   :  { %3188 = vmatprep.subr.bf16.mxu0 %v3525_v0 }
0x104b   :  { %v1379_v56 = vpop.f32.mrb[44].mxu1 }
0x104c   :  { %v1380_v57 = vadd.f32 %v1379_v56, %v1329_v16  ;;  %v3160_v58 = vpop.f32.mrb[45].mxu1 }
0x104d   :  { %v1382_v26 = vpop.f32.mrb[46].mxu1 }
0x104e   :  { %v3988_v61 = vpack.c.bf16 %v1380_v57, %v1380_v57  ;;  %v1383_v60 = vadd.f32 %v1382_v26, %v1329_v16  ;;  %v3161_v38 = vpop.f32.mrb[47].mxu1 }
0x1050   :  { %v3990_v40 = vpack.c.bf16 %v1383_v60, %v1383_v60  ;;  %3173 = vmatmul.mubr.msk.bf16.vlgmr.msra.gmra.mrb[48].mxu1 %vm175_vm2, %v3988_v61 }
0x1051   :  { %3184 = vmatprep.mubr.msk.bf16.mxu1 %vm3526_vm0, %v3525_v0 }
0x1052   :  { %3179 = vmatmul.mubr.msk.bf16.vlgmr.msra.gmra.mrb[44].mxu0 %vm175_vm2, %v3990_v40 }
0x1053   :  { %3190 = vmatprep.mubr.msk.bf16.mxu0 %vm3526_vm0, %v3525_v0 }
0x1123   :  { %v1478_v11 = vpop.f32.mrb[48].mxu1 }
0x1124   :  { %v1479_v12 = vadd.f32 %v1478_v11, %v4000_v2  ;;  %v3174_v13 = vpop.f32.mrb[49].mxu1 }
0x1125   :  { %v1481_v49 = vpop.f32.mrb[50].mxu1  ;;  %v1527_v53 = vpop.f32.mrb[44].mxu0 }
0x1126   :  { %v1528_v14 = vadd.f32 %v1527_v53, %v4002_v6  ;;  %v3175_v16 = vpop.f32.mrb[51].mxu1  ;;  %v3180_v17 = vpop.f32.mrb[45].mxu0  ;;  %v1533_v31 = vsel %vm175_vm2, %v1479_v12, -inf }
0x1127   :  { %v1530_v19 = vpop.f32.mrb[46].mxu0  ;;  %1534 = vmax.xlane.f32.xlu1 %v1533_v31 }
0x1128   :  { %v3181_v20 = vpop.f32.mrb[47].mxu0  ;;  %v1536_v22 = vsel %vm175_vm2, %v1528_v14, -inf }
0x1129   :  { %1537 = vmax.xlane.f32.xlu0 %v1536_v22 }
0x11b4   :  { %v1535_v15 = vpop.xlane.xlu1 %1534 }
0x11b5   :  { %v1539_v27 = vsub.f32 %v1479_v12, %v1535_v15 }
0x11b6   :  { %v1538_v28 = vpop.xlane.xlu0 %1537 }
0x11b7   :  { %v1541_v29 = vmul.f32 1.442695, %v1539_v27  ;;  %v1540_v30 = vsub.f32 %v1528_v14, %v1538_v28 }
0x11b9   :  { %3384 = vpow2.f32 %v1541_v29  ;;  %v1543_v18 = vmul.f32 1.442695, %v1540_v30 }
0x11bb   :  { %3386 = vpow2.f32 %v1543_v18 }
0x11c3   :  { %v3385_v33 = vpop.eup %3384 }
0x11c4   :  { %v1545_v35 = vsel %vm175_vm2, %v3385_v33, 0.0 }
0x11c5   :  { %v3387_v36 = vpop.eup %3386  ;;  %1546 = vadd.xlane.f32.xlu1 %v1545_v35 }
0x11c6   :  { %v1548_v37 = vsel %vm175_vm2, %v3387_v36, 0.0 }
0x11c7   :  { %1549 = vadd.xlane.f32.xlu0 %v1548_v37 }
0x11d6   :  { %1557 = vrot.lane.b32.xlu1 %v3959_v21, %s3528_s9 }
0x11da   :  { %1657 = vrot.lane.b32.xlu1 %v3338_v41, %s3538_s29 }
0x11dd   :  { %1605 = vrot.lane.b32.xlu0 %v3961_v25, %s3528_s9 }
0x11de   :  { %1715 = vrot.lane.b32.xlu1 %v3959_v21, %s3529_s12 }
0x11e1   :  { %1766 = vrot.lane.b32.xlu0 %v3961_v25, %s3529_s12 }
0x11e2   :  { %1713 = vrot.lane.b32.xlu1 %v3988_v61, %s3530_s15 }
0x11e5   :  { %1764 = vrot.lane.b32.xlu0 %v3990_v40, %s3530_s15 }
0x1252   :  { %v1547_v42 = vpop.xlane.xlu1 %1546 }
0x1253   :  { %3388 = vrcp.f32 %v1547_v42 }
0x1254   :  { %v1550_v43 = vpop.xlane.xlu0 %1549 }
0x1255   :  { %3390 = vrcp.f32 %v1550_v43 }
0x1256   :  { %v1558_v45 = vpop.permute.xlu1 %1557 }
0x1257   :  { %v1563_v46 = vsel %vm300_vm3, %v1558_v45, 0 }
0x1258   :  { %v1606_v50 = vpop.permute.xlu0 %1605  ;;  %3183 = vmatpush3.bf16.msra.mxu1 %v1563_v46 }
0x1259   :  { %v1611_v51 = vsel %vm300_vm3, %v1606_v50, 0  ;;  %3194 = vmatprep.subr.bf16.mxu1 %v3525_v0 }
0x125a   :  { %3189 = vmatpush3.bf16.msra.mxu0 %v1611_v51  ;;  %v1658_v54 = vpop.permute.xlu1 %1657 }
0x125b   :  { %3200 = vmatprep.subr.bf16.mxu0 %v3525_v0  ;;  %v1663_v58 = vsel %vm300_vm3, %v1658_v54, 0 }
0x125c   :  { %v1767_v63 = vpop.permute.xlu0 %1766 }
0x125d   :  { %v3389_v55 = vpop.eup %3388  ;;  %v1772_v17 = vsel %vm175_vm2, %v1767_v63, 0 }
0x125e   :  { %v4030_v9 = vmul.f32 %v3389_v55, %v3385_v33  ;;  %v1716_v60 = vpop.permute.xlu1 %1715 }
0x125f   :  { %v3391_v56 = vpop.eup %3390  ;;  %v1721_v3 = vsel %vm175_vm2, %v1716_v60, 0 }
0x1260   :  { %v4032_v57 = vmul.f32 %v3391_v56, %v3387_v36  ;;  %v1555_v26 = vpack.c.bf16 %v4030_v9, %v4030_v9  ;;  %v1765_v15 = vpop.permute.xlu0 %1764 }
0x1262   :  { %3185 = vmatmul.mubr.msk.bf16.vlgmr.msra.gmra.mrb[52].mxu1 %vm175_vm2, %v1555_v26  ;;  %v1556_v38 = vpack.c.bf16 %v4032_v57, %v4032_v57  ;;  %v1714_v4 = vpop.permute.xlu1 %1713 }
0x1263   :  { %3195 = vmatpush3.bf16.msra.mxu1 %v1663_v58  ;;  %3196 = vmatprep.mubr.msk.bf16.mxu1 %vm3526_vm0, %v3525_v0 }
0x1264   :  { %3191 = vmatmul.mubr.msk.bf16.vlgmr.msra.gmra.mrb[48].mxu0 %vm175_vm2, %v1556_v38  ;;  %3206 = vmatprep.subr.bf16.mxu1 %v3525_v0 }
0x1265   :  { %3201 = vmatpush3.bf16.xpose.msra.mxu0 %v1721_v3  ;;  %3202 = vmatprep.mubr.msk.bf16.mxu0 %vm3526_vm0, %v3525_v0 }
0x1266   :  { %3212 = vmatprep.subr.bf16.mxu0 %v3525_v0 }
0x126c   :  { %3203 = vmatmul.mubr.msk.bf16.vlgmr.msra.gmra.mrb[52].mxu0 %vm175_vm2, %v1714_v4 }
0x126d   :  { %3214 = vmatprep.mubr.msk.bf16.mxu0 %vm3526_vm0, %v3525_v0 }
0x1335   :  { %v1599_v62 = vpop.f32.mrb[52].mxu1 }
0x1336   :  { %v3186_v11 = vpop.f32.mrb[53].mxu1 }
0x1337   :  { %v1602_v12 = vpop.f32.mrb[54].mxu1  ;;  %v1647_v13 = vpop.f32.mrb[48].mxu0 }
0x1338   :  { %v1653_v49 = vpack.c.bf16 %v1647_v13, %v1599_v62  ;;  %v3187_v53 = vpop.f32.mrb[55].mxu1  ;;  %v3192_v14 = vpop.f32.mrb[49].mxu0  ;;  %v3339_v13 = vld [vmem:[%s4326_s4 + $0x14] ss:$0 sps:$4 sm:$0xff]  }
0x1339   :  { %v1650_v16 = vpop.f32.mrb[50].mxu0 }
0x133a   :  { %v3193_v31 = vpop.f32.mrb[51].mxu0  ;;  %3197 = vmatmul.mubr.msk.bf16.vlgmr.msra.gmra.mrb[56].mxu1 %vm175_vm2, %v1653_v49 }
0x133b   :  { %3207 = vmatpush3.bf16.xpose.msra.mxu1 %v1772_v17  ;;  %3208 = vmatprep.mubr.msk.bf16.mxu1 %vm3526_vm0, %v3525_v0 }
0x133c   :  { %3218 = vmatprep.subr.bf16.mxu1 %v3525_v0 }
0x133f   :  { %v1757_v19 = vpop.f32.mrb[52].mxu0 }
0x1340   :  { %v1758_v20 = vadd.f32 %v1757_v19, %v4000_v2  ;;  %v3204_v22 = vpop.f32.mrb[53].mxu0 }
0x1341   :  { %v1760_v27 = vpop.f32.mrb[54].mxu0 }
0x1342   :  { %v3205_v28 = vpop.f32.mrb[55].mxu0  ;;  %3209 = vmatmul.mubr.msk.bf16.vlgmr.msra.gmra.mrb[60].mxu1 %vm175_vm2, %v1765_v15  ;;  %v1814_v29 = vsel %vm175_vm2, %v1758_v20, -inf }
0x1343   :  { %1815 = vmax.xlane.f32.xlu1 %v1814_v29  ;;  %3220 = vmatprep.mubr.msk.bf16.mxu1 %vm3526_vm0, %v3525_v0 }
0x13d0   :  { %v1816_v30 = vpop.xlane.xlu1 %1815 }
0x13d1   :  { %v1820_v18 = vsub.f32 %v1758_v20, %v1816_v30 }
0x13d3   :  { %v1822_v33 = vmul.f32 1.442695, %v1820_v18 }
0x13d5   :  { %3392 = vpow2.f32 %v1822_v33 }
0x13df   :  { %v3393_v54 = vpop.eup %3392 }
0x13e0   :  { %v1826_v55 = vsel %vm175_vm2, %v3393_v54, 0.0 }
0x140d   :  { %v4061_v35 = vpop.f32.mrb[56].mxu1 }
0x140e   :  { %v3198_v36 = vpop.f32.mrb[57].mxu1 }
0x140f   :  { %v4063_v37 = vpop.f32.mrb[58].mxu1 }
0x1410   :  { %v3199_v41 = vpop.f32.mrb[59].mxu1 }
0x1415   :  { %v1808_v42 = vpop.f32.mrb[60].mxu1 }
0x1416   :  { %v1809_v43 = vadd.f32 %v1808_v42, %v4002_v6  ;;  %v3210_v45 = vpop.f32.mrb[61].mxu1 }
0x1417   :  { %v1811_v46 = vpop.f32.mrb[62].mxu1 }
0x1418   :  { %v3211_v50 = vpop.f32.mrb[63].mxu1  ;;  %v1817_v51 = vsel %vm175_vm2, %v1809_v43, -inf }
0x1419   :  { %1818 = vmax.xlane.f32.xlu0 %v1817_v51 }
0x141d   :  { %1827 = vadd.xlane.f32.xlu0 %v1826_v55 }
0x1433   :  { %1838 = vrot.lane.b32.xlu0 %v3959_v21, %s3531_s16 }
0x1437   :  { %1991 = vrot.lane.b32.xlu0 %v3959_v21, %s3532_s1 }
0x143b   :  { %1989 = vrot.lane.b32.xlu0 %v3988_v61, %s3533_s27 }
0x14a6   :  { %v1819_v56 = vpop.xlane.xlu0 %1818 }
0x14a7   :  { %v1821_v58 = vsub.f32 %v1809_v43, %v1819_v56 }
0x14a9   :  { %v1824_v26 = vmul.f32 1.442695, %v1821_v58 }
0x14aa   :  { %v1828_v60 = vpop.xlane.xlu0 %1827 }
0x14ab   :  { %3394 = vpow2.f32 %v1824_v26 }
0x14ac   :  { %3396 = vrcp.f32 %v1828_v60 }
0x14ae   :  { %v1839_v38 = vpop.permute.xlu0 %1838 }
0x14af   :  { %v1844_v3 = vsel %vm300_vm3, %v1839_v38, 0 }
0x14b0   :  { %3213 = vmatpush3.bf16.msra.mxu0 %v1844_v3 }
0x14b1   :  { %3224 = vmatprep.subr.bf16.mxu0 %v3525_v0 }
0x14b2   :  { %v1992_v20 = vpop.permute.xlu0 %1991 }
0x14b3   :  { %v1997_v15 = vsel %vm175_vm2, %v1992_v20, 0 }
0x14b5   :  { %v3395_v4 = vpop.eup %3394 }
0x14b6   :  { %v3397_v62 = vpop.eup %3396  ;;  %v1829_v63 = vsel %vm175_vm2, %v3395_v4, 0.0  ;;  %v1990_v27 = vpop.permute.xlu0 %1989 }
0x14b7   :  { %v4077_v11 = vmul.f32 %v3397_v62, %v3393_v54  ;;  %1830 = vadd.xlane.f32.xlu1 %v1829_v63  ;;  %v1708_v63 = vsub.s32 5, %v3682_v7 }
0x14b9   :  { %v1836_v12 = vpack.c.bf16 %v4077_v11, %v4077_v11 }
0x14bb   :  { %3215 = vmatmul.mubr.msk.bf16.vlgmr.msra.gmra.mrb[56].mxu0 %vm175_vm2, %v1836_v12  ;;  %v4122_v12 = vld [vmem:[#allocation7] sm:$0xff] }
0x14bc   :  { %3226 = vmatprep.mubr.msk.bf16.mxu0 %vm3526_vm0, %v3525_v0 }
0x14c8   :  { %1886 = vrot.lane.b32.xlu1 %v3961_v25, %s3531_s16 }
0x14cc   :  { %1938 = vrot.lane.b32.xlu1 %v3339_v13, %s3538_s29  ;;  %v1709_v13 = vrot.slane %v4122_v12, %v1708_v63 }
0x14d0   :  { %2041 = vrot.lane.b32.xlu1 %v3961_v25, %s3532_s1 }
0x14d4   :  { %2039 = vrot.lane.b32.xlu1 %v3990_v40, %s3533_s27 }
0x1544   :  { %v1831_v49 = vpop.xlane.xlu1 %1830 }
0x1545   :  { %3398 = vrcp.f32 %v1831_v49  ;;  %v1710_v49 = vadd.f32 %v1709_v13, %v4061_v35  ;;  %v3340_v35 = vld [vmem:[%s4326_s4 + $0x20] ss:$0 sps:$4 sm:$0xff]  }
0x1548   :  { %v1887_v53 = vpop.permute.xlu1 %1886 }
0x1549   :  { %v1892_v14 = vsel %vm300_vm3, %v1887_v53, 0 }
0x154a   :  { %3219 = vmatpush3.bf16.msra.mxu1 %v1892_v14  ;;  %v1711_v14 = vadd.f32 %v1709_v13, %v4063_v37 }
0x154b   :  { %3230 = vmatprep.subr.bf16.mxu1 %v3525_v0 }
0x154c   :  { %v1939_v16 = vpop.permute.xlu1 %1938 }
0x154d   :  { %v1944_v17 = vsel %vm300_vm3, %v1939_v16, 0 }
0x154e   :  { %3225 = vmatpush3.bf16.msra.mxu0 %v1944_v17 }
0x154f   :  { %v3399_v31 = vpop.eup %3398  ;;  %3236 = vmatprep.subr.bf16.mxu0 %v3525_v0 }
0x1550   :  { %v4098_v19 = vmul.f32 %v3399_v31, %v3395_v4  ;;  %v2042_v33 = vpop.permute.xlu1 %2041 }
0x1551   :  { %v2047_v45 = vsel %vm175_vm2, %v2042_v33, 0 }
0x1552   :  { %v1837_v22 = vpack.c.bf16 %v4098_v19, %v4098_v19 }
0x1554   :  { %3221 = vmatmul.mubr.msk.bf16.vlgmr.msra.gmra.mrb[64].mxu1 %vm175_vm2, %v1837_v22  ;;  %v2040_v55 = vpop.permute.xlu1 %2039 }
0x1555   :  { %3231 = vmatpush3.bf16.xpose.msra.mxu1 %v1997_v15  ;;  %3232 = vmatprep.mubr.msk.bf16.mxu1 %vm3526_vm0, %v3525_v0 }
0x1556   :  { %3242 = vmatprep.subr.bf16.mxu1 %v3525_v0 }
0x155c   :  { %3233 = vmatmul.mubr.msk.bf16.vlgmr.msra.gmra.mrb[68].mxu1 %vm175_vm2, %v1990_v27 }
0x155d   :  { %3244 = vmatprep.mubr.msk.bf16.mxu1 %vm3526_vm0, %v3525_v0 }
0x158e   :  { %v1880_v28 = vpop.f32.mrb[56].mxu0 }
0x158f   :  { %v3216_v29 = vpop.f32.mrb[57].mxu0 }
0x1590   :  { %v1883_v30 = vpop.f32.mrb[58].mxu0 }
0x1591   :  { %v3217_v18 = vpop.f32.mrb[59].mxu0 }
0x1627   :  { %v1928_v36 = vpop.f32.mrb[64].mxu1 }
0x1628   :  { %v1934_v41 = vpack.c.bf16 %v1928_v36, %v1880_v28  ;;  %v3222_v42 = vpop.f32.mrb[65].mxu1 }
0x1629   :  { %v1931_v43 = vpop.f32.mrb[66].mxu1 }
0x162a   :  { %v3223_v46 = vpop.f32.mrb[67].mxu1  ;;  %3227 = vmatmul.mubr.msk.bf16.vlgmr.msra.gmra.mrb[60].mxu0 %vm175_vm2, %v1934_v41 }
0x162b   :  { %3237 = vmatpush3.bf16.xpose.msra.mxu0 %v2047_v45  ;;  %3238 = vmatprep.mubr.msk.bf16.mxu0 %vm3526_vm0, %v3525_v0 }
0x162c   :  { %3248 = vmatprep.subr.bf16.mxu0 %v3525_v0 }
0x162f   :  { %v2033_v50 = vpop.f32.mrb[68].mxu1 }
0x1630   :  { %v2034_v51 = vadd.f32 %v2033_v50, %v4000_v2  ;;  %v3234_v54 = vpop.f32.mrb[69].mxu1 }
0x1631   :  { %v2036_v56 = vpop.f32.mrb[70].mxu1 }
0x1632   :  { %v3235_v58 = vpop.f32.mrb[71].mxu1  ;;  %3239 = vmatmul.mubr.msk.bf16.vlgmr.msra.gmra.mrb[64].mxu0 %vm175_vm2, %v2040_v55  ;;  %v2089_v26 = vsel %vm175_vm2, %v2034_v51, -inf }
0x1633   :  { %2090 = vmax.xlane.f32.xlu0 %v2089_v26  ;;  %3250 = vmatprep.mubr.msk.bf16.mxu0 %vm3526_vm0, %v3525_v0 }
0x16c0   :  { %v2091_v60 = vpop.xlane.xlu0 %2090 }
0x16c1   :  { %v2095_v38 = vsub.f32 %v2034_v51, %v2091_v60 }
0x16c3   :  { %v2097_v3 = vmul.f32 1.442695, %v2095_v38 }
0x16c5   :  { %3400 = vpow2.f32 %v2097_v3 }
0x16cf   :  { %v3401_v4 = vpop.eup %3400 }
0x16d0   :  { %v2101_v62 = vsel %vm175_vm2, %v3401_v4, 0.0 }
0x16d1   :  { %2102 = vadd.xlane.f32.xlu0 %v2101_v62 }
0x16fd   :  { %v1980_v53 = vpop.f32.mrb[60].mxu0 }
0x16fe   :  { %v4127_v16 = vadd.f32 %v1980_v53, %v1710_v49  ;;  %v3228_v17 = vpop.f32.mrb[61].mxu0 }
0x16ff   :  { %v1983_v31 = vpop.f32.mrb[62].mxu0 }
0x1700   :  { %v4129_v20 = vadd.f32 %v1983_v31, %v1711_v14  ;;  %v3229_v22 = vpop.f32.mrb[63].mxu0 }
0x1705   :  { %v2083_v15 = vpop.f32.mrb[64].mxu0 }
0x1706   :  { %v2084_v27 = vadd.f32 %v2083_v15, %v4002_v6  ;;  %v3240_v28 = vpop.f32.mrb[65].mxu0 }
0x1707   :  { %v2086_v29 = vpop.f32.mrb[66].mxu0 }
0x1708   :  { %v3241_v30 = vpop.f32.mrb[67].mxu0  ;;  %v2092_v18 = vsel %vm175_vm2, %v2084_v27, -inf }
0x1709   :  { %2093 = vmax.xlane.f32.xlu1 %v2092_v18 }
0x171a   :  { %2113 = vrot.lane.b32.xlu1 %v3959_v21, %s3534_s19 }
0x171e   :  { %2213 = vrot.lane.b32.xlu1 %v3340_v35, %s3538_s29 }
0x1722   :  { %2266 = vrot.lane.b32.xlu1 %v3959_v21, %s3535_s22 }
0x1726   :  { %2264 = vrot.lane.b32.xlu1 %v3988_v61, %s3536_s23 }
0x175e   :  { %v2103_v37 = vpop.xlane.xlu0 %2102 }
0x175f   :  { %3402 = vrcp.f32 %v2103_v37 }
0x1769   :  { %v3403_v33 = vpop.eup %3402 }
0x176a   :  { %v4143_v42 = vmul.f32 %v3403_v33, %v3401_v4 }
0x176c   :  { %v2111_v50 = vpack.c.bf16 %v4143_v42, %v4143_v42 }
0x1796   :  { %v2094_v36 = vpop.xlane.xlu1 %2093 }
0x1797   :  { %v2096_v41 = vsub.f32 %v2084_v27, %v2094_v36 }
0x1799   :  { %v2099_v43 = vmul.f32 1.442695, %v2096_v41 }
0x179a   :  { %v2114_v45 = vpop.permute.xlu1 %2113 }
0x179b   :  { %3404 = vpow2.f32 %v2099_v43  ;;  %v2119_v46 = vsel %vm300_vm3, %v2114_v45, 0 }
0x179c   :  { %3243 = vmatpush3.bf16.msra.mxu1 %v2119_v46 }
0x179d   :  { %3254 = vmatprep.subr.bf16.mxu1 %v3525_v0 }
0x179e   :  { %v2214_v51 = vpop.permute.xlu1 %2213 }
0x179f   :  { %v2219_v61 = vsel %vm300_vm3, %v2214_v51, 0  ;;  %3245 = vmatmul.mubr.msk.bf16.vlgmr.msra.gmra.mrb[72].mxu1 %vm175_vm2, %v2111_v50 }
0x17a0   :  { %3255 = vmatpush3.bf16.msra.mxu1 %v2219_v61  ;;  %3256 = vmatprep.mubr.msk.bf16.mxu1 %vm3526_vm0, %v3525_v0 }
0x17a1   :  { %3266 = vmatprep.subr.bf16.mxu1 %v3525_v0 }
0x17a2   :  { %v2267_v3 = vpop.permute.xlu1 %2266 }
0x17a3   :  { %v2272_v62 = vsel %vm175_vm2, %v2267_v3, 0 }
0x17a5   :  { %v3405_v54 = vpop.eup %3404 }
0x17a6   :  { %v2104_v55 = vsel %vm175_vm2, %v3405_v54, 0.0 }
0x17a7   :  { %2105 = vadd.xlane.f32.xlu0 %v2104_v55 }
0x17bd   :  { %2161 = vrot.lane.b32.xlu0 %v3961_v25, %s3534_s19 }
0x17c1   :  { %2316 = vrot.lane.b32.xlu0 %v3961_v25, %s3535_s22 }
0x17c5   :  { %2314 = vrot.lane.b32.xlu0 %v3990_v40, %s3536_s23  ;;  %v2265_v40 = vpop.permute.xlu1 %2264 }
0x1834   :  { %v2106_v56 = vpop.xlane.xlu0 %2105 }
0x1835   :  { %3406 = vrcp.f32 %v2106_v56 }
0x1838   :  { %v2162_v58 = vpop.permute.xlu0 %2161 }
0x1839   :  { %v2167_v26 = vsel %vm300_vm3, %v2162_v58, 0 }
0x183a   :  { %3249 = vmatpush3.bf16.msra.mxu0 %v2167_v26 }
0x183b   :  { %3260 = vmatprep.subr.bf16.mxu0 %v3525_v0 }
0x183c   :  { %v2317_v14 = vpop.permute.xlu0 %2316 }
0x183d   :  { %v2322_v27 = vsel %vm175_vm2, %v2317_v14, 0 }
0x183f   :  { %v3407_v60 = vpop.eup %3406 }
0x1840   :  { %v4163_v38 = vmul.f32 %v3407_v60, %v3405_v54  ;;  %v2315_v35 = vpop.permute.xlu0 %2314 }
0x1842   :  { %v2112_v4 = vpack.c.bf16 %v4163_v38, %v4163_v38 }
0x1844   :  { %3251 = vmatmul.mubr.msk.bf16.vlgmr.msra.gmra.mrb[68].mxu0 %vm175_vm2, %v2112_v4 }
0x1845   :  { %3261 = vmatpush3.bf16.xpose.msra.mxu0 %v2272_v62  ;;  %3262 = vmatprep.mubr.msk.bf16.mxu0 %vm3526_vm0, %v3525_v0 }
0x1846   :  { %3272 = vmatprep.subr.bf16.mxu0 %v3525_v0 }
0x184c   :  { %3263 = vmatmul.mubr.msk.bf16.vlgmr.msra.gmra.mrb[72].mxu0 %vm175_vm2, %v2265_v40 }
0x184d   :  { %3274 = vmatprep.mubr.msk.bf16.mxu0 %vm3526_vm0, %v3525_v0 }
0x1872   :  { %v2155_v63 = vpop.f32.mrb[72].mxu1 }
0x1873   :  { %v3246_v13 = vpop.f32.mrb[73].mxu1 }
0x1874   :  { %v2158_v49 = vpop.f32.mrb[74].mxu1 }
0x1875   :  { %v3247_v53 = vpop.f32.mrb[75].mxu1 }
0x1917   :  { %v2203_v17 = vpop.f32.mrb[68].mxu0 }
0x1918   :  { %v2209_v31 = vpack.c.bf16 %v2203_v17, %v2155_v63  ;;  %v3252_v22 = vpop.f32.mrb[69].mxu0 }
0x1919   :  { %v2206_v15 = vpop.f32.mrb[70].mxu0 }
0x191a   :  { %v3253_v28 = vpop.f32.mrb[71].mxu0  ;;  %3257 = vmatmul.mubr.msk.bf16.vlgmr.msra.gmra.mrb[76].mxu1 %vm175_vm2, %v2209_v31  ;;  %v3341_v31 = vld [vmem:[%s4326_s4 + $0x2c] ss:$0 sps:$4 sm:$0xff]  }
0x191b   :  { %3267 = vmatpush3.bf16.xpose.msra.mxu1 %v2322_v27  ;;  %3268 = vmatprep.mubr.msk.bf16.mxu1 %vm3526_vm0, %v3525_v0 }
0x191c   :  { %3278 = vmatprep.subr.bf16.mxu1 %v3525_v0 }
0x191f   :  { %v2308_v29 = vpop.f32.mrb[72].mxu0 }
0x1920   :  { %v2309_v30 = vadd.f32 %v2308_v29, %v4000_v2  ;;  %v3264_v18 = vpop.f32.mrb[73].mxu0 }
0x1921   :  { %v2311_v37 = vpop.f32.mrb[74].mxu0 }
0x1922   :  { %v3265_v33 = vpop.f32.mrb[75].mxu0  ;;  %3269 = vmatmul.mubr.msk.bf16.vlgmr.msra.gmra.mrb[80].mxu1 %vm175_vm2, %v2315_v35  ;;  %v2364_v36 = vsel %vm175_vm2, %v2309_v30, -inf }
0x1923   :  { %2365 = vmax.xlane.f32.xlu1 %v2364_v36  ;;  %3280 = vmatprep.mubr.msk.bf16.mxu1 %vm3526_vm0, %v3525_v0 }
0x19b0   :  { %v2366_v41 = vpop.xlane.xlu1 %2365 }
0x19b1   :  { %v2370_v43 = vsub.f32 %v2309_v30, %v2366_v41 }
0x19b3   :  { %v2372_v45 = vmul.f32 1.442695, %v2370_v43 }
0x19b5   :  { %3408 = vpow2.f32 %v2372_v45 }
0x19bf   :  { %v3409_v4 = vpop.eup %3408 }
0x19ed   :  { %v2255_v46 = vpop.f32.mrb[76].mxu1 }
0x19ee   :  { %v4186_v50 = vadd.f32 %v2255_v46, %v4127_v16  ;;  %v3258_v2 = vpop.f32.mrb[77].mxu1  ;;  %v2376_v16 = vsel %vm175_vm2, %v3409_v4, 0.0 }
0x19ef   :  { %v2258_v51 = vpop.f32.mrb[78].mxu1 }
0x19f0   :  { %v4189_v61 = vadd.f32 %v2258_v51, %v4129_v20  ;;  %v3259_v54 = vpop.f32.mrb[79].mxu1 }
0x19f5   :  { %v2358_v55 = vpop.f32.mrb[80].mxu1 }
0x19f6   :  { %v2359_v56 = vadd.f32 %v2358_v55, %v4002_v6  ;;  %v3270_v58 = vpop.f32.mrb[81].mxu1 }
0x19f7   :  { %v2361_v26 = vpop.f32.mrb[82].mxu1 }
0x19f8   :  { %v3271_v60 = vpop.f32.mrb[83].mxu1  ;;  %v2367_v3 = vsel %vm175_vm2, %v2359_v56, -inf }
0x19f9   :  { %2368 = vmax.xlane.f32.xlu0 %v2367_v3 }
0x19fd   :  { %2377 = vadd.xlane.f32.xlu0 %v2376_v16 }
0x1a13   :  { %2388 = vrot.lane.b32.xlu0 %v3959_v21, %s3537_s24 }
0x1a86   :  { %v2369_v62 = vpop.xlane.xlu0 %2368 }
0x1a87   :  { %v2371_v20 = vsub.f32 %v2359_v56, %v2369_v62 }
0x1a89   :  { %v2374_v40 = vmul.f32 1.442695, %v2371_v20 }
0x1a8a   :  { %v2378_v63 = vpop.xlane.xlu0 %2377 }
0x1a8b   :  { %3410 = vpow2.f32 %v2374_v40 }
0x1a8c   :  { %3412 = vrcp.f32 %v2378_v63 }
0x1a8e   :  { %v2389_v6 = vpop.permute.xlu0 %2388 }
0x1a8f   :  { %v2394_v13 = vsel %vm300_vm3, %v2389_v6, 0 }
0x1a90   :  { %3273 = vmatpush3.bf16.msra.mxu0 %v2394_v13 }
0x1a91   :  { %3284 = vmatprep.subr.bf16.mxu0 %v3525_v0 }
0x1a95   :  { %v3411_v49 = vpop.eup %3410 }
0x1a96   :  { %v3413_v53 = vpop.eup %3412  ;;  %v2379_v14 = vsel %vm175_vm2, %v3411_v49, 0.0 }
0x1a97   :  { %v4199_v17 = vmul.f32 %v3413_v53, %v3409_v4  ;;  %2380 = vadd.xlane.f32.xlu1 %v2379_v14  ;;  %v3343_v53 = vld [vmem:[%s4326_s4 + $0x20] ss:$12 sps:$4 sm:$0xff]  }
0x1a98   :  { %v3344_v14 = vld [vmem:[%s4327_s5] sm:$0xff]  }
0x1a99   :  { %v2386_v21 = vpack.c.bf16 %v4199_v17, %v4199_v17 }
0x1a9b   :  { %3275 = vmatmul.mubr.msk.bf16.vlgmr.msra.gmra.mrb[76].mxu0 %vm175_vm2, %v2386_v21  ;;  %v3345_v21 = vld [vmem:[%s4327_s5 + $0x8] sm:$0xff]  }
0x1a9c   :  { %3286 = vmatprep.mubr.msk.bf16.mxu0 %vm3526_vm0, %v3525_v0 }
0x1aa8   :  { %2436 = vrot.lane.b32.xlu1 %v3961_v25, %s3537_s24 }
0x1aac   :  { %2488 = vrot.lane.b32.xlu1 %v3341_v31, %s3538_s29 }
0x1b24   :  { %v2381_v22 = vpop.xlane.xlu1 %2380 }
0x1b25   :  { %3414 = vrcp.f32 %v2381_v22 }
0x1b28   :  { %v2437_v15 = vpop.permute.xlu1 %2436 }
0x1b29   :  { %v2442_v27 = vsel %vm300_vm3, %v2437_v15, 0 }
0x1b2a   :  { %3279 = vmatpush3.bf16.msra.mxu1 %v2442_v27 }
0x1b2b   :  { %3290 = vmatprep.subr.bf16.mxu1 %v3525_v0 }
0x1b2c   :  { %v2489_v30 = vpop.permute.xlu1 %2488 }
0x1b2d   :  { %v2494_v18 = vsel %vm300_vm3, %v2489_v30, 0  ;;  %v2569_v30 = vsub.s32 6, %v3682_v7 }
0x1b2e   :  { %3285 = vmatpush3.bf16.msra.mxu0 %v2494_v18 }
0x1b2f   :  { %v3415_v28 = vpop.eup %3414  ;;  %3298 = vmatprep.subr.bf16.mxu0 %v3525_v0 }
0x1b30   :  { %v4214_v29 = vmul.f32 %v3415_v28, %v3411_v49 }
0x1b32   :  { %v2387_v25 = vpack.c.bf16 %v4214_v29, %v4214_v29 }
0x1b34   :  { %3281 = vmatmul.mubr.msk.bf16.vlgmr.msra.gmra.mrb[84].mxu1 %vm175_vm2, %v2387_v25 }
0x1b35   :  { %3294 = vmatprep.mubr.msk.bf16.mxu1 %vm3526_vm0, %v3525_v0 }
0x1b6e   :  { %v2430_v35 = vpop.f32.mrb[76].mxu0 }
0x1b6f   :  { %v3276_v37 = vpop.f32.mrb[77].mxu0 }
0x1b70   :  { %v2433_v33 = vpop.f32.mrb[78].mxu0 }
0x1b71   :  { %v3277_v36 = vpop.f32.mrb[79].mxu0  ;;  %v2575_v33 = vsub.s32 7, %v3682_v7 }
0x1c07   :  { %v2478_v41 = vpop.f32.mrb[84].mxu1 }
0x1c08   :  { %v2484_v43 = vpack.c.bf16 %v2478_v41, %v2430_v35  ;;  %v3282_v45 = vpop.f32.mrb[85].mxu1  ;;  %v2570_v35 = vrot.slane %v4122_v12, %v2569_v30 }
0x1c09   :  { %v2481_v46 = vpop.f32.mrb[86].mxu1  ;;  %v2576_v45 = vrot.slane %v4122_v12, %v2575_v33 }
0x1c0a   :  { %v3283_v2 = vpop.f32.mrb[87].mxu1  ;;  %3287 = vmatmul.mubr.msk.bf16.vlgmr.msra.gmra.mrb[80].mxu0 %vm175_vm2, %v2484_v43 }
0x1c0b   :  { %3306 = vmatprep.mubr.msk.bf16.mxu0 %vm3526_vm0, %v3525_v0  ;;  %3299 = vmatpush3.bf16.msra.mxu0 %v3344_v14 }
0x1c0c   :  { %3300 = vmatprep.subr.bf16.mxu0 %v3525_v0 }
0x1c0f   :  { %3301 = vmatpush3.bf16.msra.mxu0 %v3345_v21 }
0x1c10   :  { %3302 = vmatprep.subr.bf16.mxu0 %v3525_v0 }
0x1cdd   :  { %v2530_v51 = vpop.f32.mrb[80].mxu0 }
0x1cde   :  { %v2537_v54 = vadd.f32 %v2530_v51, %v4186_v50  ;;  %v3288_v55 = vpop.f32.mrb[81].mxu0 }
0x1cdf   :  { %v2533_v56 = vpop.f32.mrb[82].mxu0  ;;  %v3346_v55 = vld [vmem:[%s4327_s5 + $0x10] sm:$0xff]  }
0x1ce0   :  { %v2538_v58 = vadd.f32 %v2533_v56, %v4189_v61  ;;  %v3289_v26 = vpop.f32.mrb[83].mxu0  ;;  %v2539_v60 = vadd.f32 %v2537_v54, %v3975_v47  ;;  %3303 = vmatpush3.bf16.msra.mxu0 %v3346_v55  ;;  %v3347_v56 = vld [vmem:[%s4327_s5 + $0x18] sm:$0xff]  }
0x1ce1   :  { %3304 = vmatprep.subr.bf16.mxu0 %v3525_v0 }
0x1ce2   :  { %v2541_v3 = vsel %vm125_vm1, %v2539_v60, 0.0  ;;  %v2540_v4 = vadd.f32 %v2538_v58, %v3977_v48  ;;  %v3342_v48 = vld [vmem:[%s4326_s4 + $0x8] ss:$12 sps:$4 sm:$0xff]   ;;  %v4261_v58 = vld [vmem:[#allocation7 + $0x8] sm:$0xff] }
0x1ce3   :  { %2542 = vadd.xlane.f32.xlu0 %v2541_v3  ;;  %3291 = vmatpush3.bf16.msra.mxu1 %v3342_v48  ;;  %v2595_v12 = vrot.slane %v4261_v58, %v111_v8  ;;  %v2765_v33 = vrot.slane %v4261_v58, %v1313_v39 }
0x1ce4   :  { %v2544_v16 = vsel %vm125_vm1, %v2540_v4, 0.0  ;;  %3292 = vmatprep.subr.bf16.mxu1 %v3525_v0  ;;  %3305 = vmatpush3.bf16.msra.mxu0 %v3347_v56 }
0x1ce5   :  { %2545 = vadd.xlane.f32.xlu1 %v2544_v16 }
0x1ce7   :  { %3293 = vmatpush3.bf16.msra.mxu1 %v3343_v53 }
0x1d70   :  { %v2543_v62 = vpop.xlane.xlu0 %2542 }
0x1d71   :  { %v2547_v20 = vmul.f32 0.03125, %v2543_v62 }
0x1d72   :  { %v2546_v40 = vpop.xlane.xlu1 %2545 }
0x1d73   :  { %v2549_v63 = vsub.f32 %v2539_v60, %v2547_v20  ;;  %v2548_v50 = vmul.f32 0.03125, %v2546_v40 }
0x1d75   :  { %v2550_v6 = vsub.f32 %v2540_v4, %v2548_v50  ;;  %v2551_v13 = vmul.f32 %v2549_v63, %v2549_v63 }
0x1d77   :  { %v2553_v61 = vsel %vm125_vm1, %v2551_v13, 0.0  ;;  %v2552_v49 = vmul.f32 %v2550_v6, %v2550_v6 }
0x1d78   :  { %2554 = vadd.xlane.f32.xlu0 %v2553_v61 }
0x1d79   :  { %v2556_v47 = vsel %vm125_vm1, %v2552_v49, 0.0 }
0x1d7c   :  { %2557 = vadd.xlane.f32.xlu0 %v2556_v47 }
0x1e05   :  { %v2555_v31 = vpop.xlane.xlu0 %2554 }
0x1e06   :  { %v2559_v22 = vmul.f32 0.03125, %v2555_v31 }
0x1e08   :  { %v2561_v15 = vadd.f32 1e-05, %v2559_v22 }
0x1e09   :  { %v2558_v27 = vpop.xlane.xlu0 %2557 }
0x1e0a   :  { %3416 = vrsqrt.f32 %v2561_v15  ;;  %v2560_v28 = vmul.f32 0.03125, %v2558_v27 }
0x1e0c   :  { %v2562_v25 = vadd.f32 1e-05, %v2560_v28 }
0x1e0e   :  { %3418 = vrsqrt.f32 %v2562_v25 }
0x1e14   :  { %v3417_v18 = vpop.eup %3416 }
0x1e15   :  { %v2565_v37 = vmul.f32 %v3417_v18, %v2549_v63  ;;  %v2658_v63 = vrot.slane %v4261_v58, %v447_v44 }
0x1e17   :  { %v2571_v41 = vmul.f32 %v2570_v35, %v2565_v37 }
0x1e18   :  { %v3419_v36 = vpop.eup %3418 }
0x1e19   :  { %v2566_v43 = vmul.f32 %v3419_v36, %v2550_v6  ;;  %v2577_v2 = vadd.f32 %v2576_v45, %v2571_v41 }
0x1e1b   :  { %v2572_v46 = vmul.f32 %v2570_v35, %v2566_v43 }
0x1e1d   :  { %v2578_v51 = vadd.f32 %v2576_v45, %v2572_v46 }
0x1e1f   :  { %v2591_v54 = vpack.c.bf16 %v2578_v51, %v2577_v2 }
0x1e21   :  { %3295 = vmatmul.mubr.msk.bf16.vlgmr.msra.gmra.mrb[88].mxu1 %vm125_vm1, %v2591_v54 }
0x1ef4   :  { %v2645_v26 = vpop.f32.mrb[88].mxu1 }
0x1ef5   :  { %v2646_v60 = vadd.f32 %v2645_v26, %v2595_v12  ;;  %v3296_v3 = vpop.f32.mrb[89].mxu1 }
0x1ef6   :  { %v2648_v4 = vpop.f32.mrb[90].mxu1 }
0x1ef7   :  { %v2649_v16 = vadd.f32 %v2648_v4, %v2595_v12  ;;  %v3297_v62 = vpop.f32.mrb[91].mxu1  ;;  %v2652_v20 = vmax.f32 %v2646_v60, 0.0 }
0x1ef9   :  { %v2653_v40 = vmax.f32 %v2649_v16, 0.0 }
0x1efb   :  { %v2654_v0 = vpack.c.bf16 %v2653_v40, %v2652_v20 }
0x1efd   :  { %3307 = vmatmul.mubr.msk.bf16.vlgmr.msra.gmra.mrb[84].mxu0 %vm2683_vm4, %v2654_v0 }
0x1fd0   :  { %v2721_v50 = vpop.f32.mrb[84].mxu0 }
0x1fd1   :  { %v2722_v6 = vadd.f32 %v2721_v50, %v2658_v63  ;;  %v3308_v13 = vpop.f32.mrb[85].mxu0 }
0x1fd2   :  { %v2724_v8 = vpop.f32.mrb[86].mxu0 }
0x1fd3   :  { %v2728_v61 = vadd.f32 %v2722_v6, %v2577_v2  ;;  %v2725_v49 = vadd.f32 %v2724_v8, %v2658_v63  ;;  %v3309_v47 = vpop.f32.mrb[87].mxu0 }
0x1fd5   :  { %v2730_v48 = vsel %vm125_vm1, %v2728_v61, 0.0  ;;  %v2729_v53 = vadd.f32 %v2725_v49, %v2578_v51 }
0x1fd6   :  { %2731 = vadd.xlane.f32.xlu1 %v2730_v48 }
0x1fd7   :  { %v2733_v14 = vsel %vm125_vm1, %v2729_v53, 0.0 }
0x1fd8   :  { %2734 = vadd.xlane.f32.xlu0 %v2733_v14 }
0x1fe7   :  { %2770 = vrot.lane.b32.xlu1 %v3740_v59, %s3538_s29 }
0x1feb   :  { %2778 = vrot.lane.b32.xlu1 %v3784_v52, %s3537_s24 }
0x1fee   :  { %2772 = vrot.lane.b32.xlu0 %v3745_v1, %s3538_s29 }
0x1fef   :  { %2780 = vrot.lane.b32.xlu1 %v3808_v10, %s3537_s24 }
0x1ff2   :  { %2786 = vrot.lane.b32.xlu0 %v3853_v5, %s3534_s19 }
0x1ff3   :  { %2788 = vrot.lane.b32.xlu1 %v3873_v24, %s3534_s19 }
0x1ff6   :  { %2794 = vrot.lane.b32.xlu0 %v3909_v23, %s3531_s16 }
0x1ff7   :  { %2796 = vrot.lane.b32.xlu1 %v3924_v32, %s3531_s16 }
0x2063   :  { %v2732_v59 = vpop.xlane.xlu1 %2731 }
0x2064   :  { %v2736_v52 = vmul.f32 0.03125, %v2732_v59 }
0x2065   :  { %v2735_v44 = vpop.xlane.xlu0 %2734 }
0x2066   :  { %v2738_v21 = vsub.f32 %v2728_v61, %v2736_v52  ;;  %v2737_v1 = vmul.f32 0.03125, %v2735_v44 }
0x2067   :  { %v2771_v24 = vpop.permute.xlu1 %2770 }
0x2068   :  { %v2739_v31 = vsub.f32 %v2729_v53, %v2737_v1  ;;  %v2740_v22 = vmul.f32 %v2738_v21, %v2738_v21 }
0x206a   :  { %v2742_v10 = vsel %vm125_vm1, %v2740_v22, 0.0  ;;  %v2741_v15 = vmul.f32 %v2739_v31, %v2739_v31 }
0x206b   :  { %2743 = vadd.xlane.f32.xlu1 %v2742_v10  ;;  %v2779_v23 = vpop.permute.xlu1 %2778 }
0x206c   :  { %v2745_v5 = vsel %vm125_vm1, %v2741_v15, 0.0 }
0x206d   :  { %2746 = vadd.xlane.f32.xlu0 %v2745_v5 }
0x206f   :  { %v2781_v32 = vpop.permute.xlu1 %2780 }
0x207c   :  { %2804 = vrot.lane.b32.xlu1 %v4032_v57, %s3528_s9  ;;  %v2773_v57 = vpop.permute.xlu0 %2772 }
0x2080   :  { %2812 = vrot.lane.b32.xlu1 %v4098_v19, %s3535_s22  ;;  %v2787_v19 = vpop.permute.xlu0 %2786 }
0x2083   :  { %2802 = vrot.lane.b32.xlu0 %v4030_v9, %s3528_s9  ;;  %v2789_v9 = vpop.permute.xlu1 %2788 }
0x2084   :  { %2820 = vrot.lane.b32.xlu1 %v4163_v38, %s3532_s1  ;;  %v2795_v38 = vpop.permute.xlu0 %2794 }
0x2087   :  { %2810 = vrot.lane.b32.xlu0 %v4077_v11, %s3535_s22  ;;  %v2797_v27 = vpop.permute.xlu1 %2796 }
0x2088   :  { %2828 = vrot.lane.b32.xlu1 %v4214_v29, %s3529_s12 }
0x208b   :  { %2818 = vrot.lane.b32.xlu0 %v4143_v42, %s3532_s1 }
0x208f   :  { %2826 = vrot.lane.b32.xlu0 %v4199_v17, %s3529_s12  ;;  %v2759_v17 = vrot.slane %v4261_v58, %v1307_v34 }
0x20f8   :  { %v2744_v28 = vpop.xlane.xlu1 %2743 }
0x20f9   :  { %v2748_v25 = vmul.f32 0.03125, %v2744_v28 }
0x20fa   :  { %v2747_v11 = vpop.xlane.xlu0 %2746 }
0x20fb   :  { %v2750_v30 = vadd.f32 1e-05, %v2748_v25  ;;  %v2749_v18 = vmul.f32 0.03125, %v2747_v11 }
0x20fc   :  { %v2805_v35 = vpop.permute.xlu1 %2804 }
0x20fd   :  { %3420 = vrsqrt.f32 %v2750_v30  ;;  %v2751_v29 = vadd.f32 1e-05, %v2749_v18 }
0x20fe   :  { %v2803_v42 = vpop.permute.xlu0 %2802 }
0x20ff   :  { %3422 = vrsqrt.f32 %v2751_v29 }
0x2100   :  { %v2813_v2 = vpop.permute.xlu1 %2812 }
0x2102   :  { %v2811_v41 = vpop.permute.xlu0 %2810 }
0x2104   :  { %v2821_v39 = vpop.permute.xlu1 %2820 }
0x2106   :  { %v2819_v34 = vpop.permute.xlu0 %2818 }
0x2107   :  { %v3421_v37 = vpop.eup %3420 }
0x2108   :  { %v2754_v36 = vmul.f32 %v3421_v37, %v2738_v21  ;;  %v2829_v13 = vpop.permute.xlu1 %2828 }
0x2109   :  { %v3423_v43 = vpop.eup %3422 }
0x210a   :  { %v2760_v45 = vmul.f32 %v2759_v17, %v2754_v36  ;;  %v2755_v46 = vmul.f32 %v3423_v43, %v2739_v31  ;;  %v2827_v0 = vpop.permute.xlu0 %2826 }
0x210c   :  { %v2761_v51 = vmul.f32 %v2759_v17, %v2755_v46  ;;  %v2766_v54 = vadd.f32 %v2765_v33, %v2760_v45 }
0x210e   :  { %v2767_v55 = vadd.f32 %v2765_v33, %v2761_v51  ;;  %v2832_v56 = vsel %vm125_vm1, %v2766_v54, %v2771_v24 }
0x210f   :  { %v2835_v12 = vsel %vm2834_vm5, %v2832_v56, %v2779_v23 }
0x2110   :  { %v2833_v7 = vsel %vm125_vm1, %v2767_v55, %v2773_v57  ;;  %v2838_v26 = vsel %vm2837_vm6, %v2835_v12, %v2787_v19 }
0x2111   :  { %v2836_v58 = vsel %vm2834_vm5, %v2833_v7, %v2781_v32  ;;  %v2841_v60 = vsel %vm2840_vm7, %v2838_v26, %v2795_v38 }
0x2112   :  { %v2839_v3 = vsel %vm2837_vm6, %v2836_v58, %v2789_v9  ;;  %v2843_v4 = vsel %vm2683_vm4, %v2841_v60, %v2803_v42 }
0x2113   :  { %v2842_v16 = vsel %vm2840_vm7, %v2839_v3, %v2797_v27  ;;  %v2846_v62 = vsel %vm2845_vm8, %v2843_v4, %v2811_v41 }
0x2114   :  { %v2844_v20 = vsel %vm2683_vm4, %v2842_v16, %v2805_v35  ;;  %v2849_v40 = vsel %vm2848_vm9, %v2846_v62, %v2819_v34 }
0x2115   :  { %v2847_v63 = vsel %vm2845_vm8, %v2844_v20, %v2813_v2  ;;  %v2852_v50 = vsel %vm2851_vm10, %v2849_v40, %v2827_v0 }
0x2116   :  { %v2850_v6 = vsel %vm2848_vm9, %v2847_v63, %v2821_v39  ;;  %v2855_v8 = vsel %vm2854_vm11, %v2852_v50, 0.0 }
0x2117   :  { %v2853_v61 = vsel %vm2851_vm10, %v2850_v6, %v2829_v13  ;;  %2857 = vst [vmem:[%s4329_s7] sm:$0xff] %v2855_v8 }
0x2118   :  { %v2856_v49 = vsel %vm2854_vm11, %v2853_v61, 0.0 }
0x2119   :  { %2858 = vst [vmem:[%s4329_s7 + $0x8] sm:$0xff] %v2856_v49 }
0x211a   :  { %2863 = vsyncpa [#allocation3], 1 }
0x211b   :  { %2864 = vsyncpa [#allocation5], 1 }
0x211c   :  { %2865 = vsyncpa [#allocation8], 1 }

</bundles_post_ra>
